<compile_context>
chip_gen: v7x
topology: tpu7x:2x2x1
jax: 0.10.0
libtpu: 0.0.40
codegen_flags: <defaults>
</compile_context>

<pallas_src>
import functools

import numpy as np
import jax
import jax.numpy as jnp
from jax.experimental import pallas as pl
from jax.experimental.pallas import tpu as pltpu


# ------------------------------ fused kernel --------------------------------

def _decoder_kernel(*refs, B, block_dims):
    """Fused Decoder forward (all blocks, all batch elements), NCL layout.

    refs layout:
      refs[0]                x_ref      (B, 2*S0, L0)       NCL bottleneck
      refs[1 : 1+nb]         skip refs  (B, S_i, Lskip_i)   NCL, deepest first
      refs[1+nb : 1+7*nb]    per block: up_w (2, Cup, Cup), up_b (Cup, 1),
                                        c1_w (3, S, 3S),    c1_b (S, 1),
                                        c2_w (3, S, S),     c2_b (S, 1)
      refs[1+7*nb]           o_ref      (B, S_f, L_f)       NCL output
      refs[2+7*nb :]         per block scratch: cat_scr (3S, Lup+2), mid_scr (S, Lup+2)
    """
    nb = len(block_dims)
    x_ref = refs[0]
    skip_refs = refs[1:1 + nb]
    w_refs = refs[1 + nb:1 + 7 * nb]
    o_ref = refs[1 + 7 * nb]
    scr_refs = refs[2 + 7 * nb:]

    # ---- per-block invariants, hoisted out of the batch loop -----------------
    hoisted = []
    for i, (S, Lin, Lup, half) in enumerate(block_dims):
        up_w, up_b, c1_w, c1_b, c2_w, c2_b = w_refs[6 * i:6 * i + 6]
        cat_scr = scr_refs[2 * i]           # (3S, Lup + 2) halo'd concat buffer
        mid_scr = scr_refs[2 * i + 1]       # (S,  Lup + 2) halo'd conv1 output
        Cup = 2 * S

        # weight slices & lane-broadcast biases: read / built exactly once per call
        up_w0 = up_w[0]                     # (Cup, Cup)
        up_w1 = up_w[1]
        c1_wk = [c1_w[k] for k in range(3)]  # each (S, 3S)
        c2_wk = [c2_w[k] for k in range(3)]  # each (S, S)
        up_bb = jnp.broadcast_to(up_b[...], (Cup, Lup))
        c1_bb = jnp.broadcast_to(c1_b[...], (S, Lup))
        c2_bb = jnp.broadcast_to(c2_b[...], (S, Lup))

        # Stride-2 lane interleave expressed as two spread matmuls (MXU is idle):
        #   up[:, 2l] = y0[:, l], up[:, 2l+1] = y1[:, l]   <=>   y0 @ Q0 + y1 @ Q1
        rows = jax.lax.broadcasted_iota(jnp.int32, (Lin, Lup), 0)
        cols = jax.lax.broadcasted_iota(jnp.int32, (Lin, Lup), 1)
        q0 = (cols == 2 * rows).astype(jnp.float32)
        q1 = (cols == 2 * rows + 1).astype(jnp.float32)

        # Zero the halo'd scratch once per call ('same' padding). The interior
        # columns [1, Lup] are fully rewritten every batch iteration; halo
        # columns 0 and Lup+1 are never written again.
        cat_scr[...] = jnp.zeros((3 * S, Lup + 2), jnp.float32)
        mid_scr[...] = jnp.zeros((S, Lup + 2), jnp.float32)

        hoisted.append((up_w0, up_w1, up_bb, c1_wk, c1_bb, c2_wk, c2_bb,
                        q0, q1, cat_scr, mid_scr))

    # ---- batch loop (B tiny & static -> unrolled) -----------------------------
    # TODO(synk): at realistic B/L, switch to lax.fori_loop / a grid axis (with
    # dimension_semantics=('parallel',...)) to bound vreg live ranges and use
    # both v7x TensorCores; also set vmem_limit_bytes per generation and cast
    # matmul inputs to bf16 once contraction depth is >=64 channels.
    for b in range(B):
        x = x_ref[b]                                       # (Cin, Lin) NCL slice
        for i, (S, Lin, Lup, half) in enumerate(block_dims):
            (up_w0, up_w1, up_bb, c1_wk, c1_bb, c2_wk, c2_bb,
             q0, q1, cat_scr, mid_scr) = hoisted[i]

            # --- ConvTranspose1d(2S, 2S, k=2, s=2): two phase matmuls + spread
            y0 = jnp.dot(up_w0, x, preferred_element_type=jnp.float32)
            y1 = jnp.dot(up_w1, x, preferred_element_type=jnp.float32)
            up = (jnp.dot(y0, q0, preferred_element_type=jnp.float32)
                  + jnp.dot(y1, q1, preferred_element_type=jnp.float32) + up_bb)

            # --- center-cropped skip + upsampled path -> channel concat
            #     (two dense stores; replaces the old per-row interleave loop)
            cat_scr[0:S, 1:1 + Lup] = skip_refs[i][b, :, half:half + Lup]
            cat_scr[S:3 * S, 1:1 + Lup] = up

            # --- Conv1d(3S -> S, k=3, 'same') + bias + ReLU: 3 shifted-slice dots
            acc = c1_bb
            for k in range(3):
                acc = acc + jnp.dot(c1_wk[k], cat_scr[:, k:k + Lup],
                                    preferred_element_type=jnp.float32)
            h1 = jnp.maximum(acc, 0.0)

            # --- Conv1d(S -> S, k=3, 'same') + bias + ReLU
            mid_scr[:, 1:1 + Lup] = h1
            acc = c2_bb
            for k in range(3):
                acc = acc + jnp.dot(c2_wk[k], mid_scr[:, k:k + Lup],
                                    preferred_element_type=jnp.float32)
            x = jnp.maximum(acc, 0.0)                      # block output (S, Lup)

        o_ref[b] = x                                        # NCL, lane-dense store


# ------------------------------ Pallas wrapper -------------------------------

def decoder_forward_pallas(params, skip_connections, x):
    """params: per-block dicts (kernel layout); skip_connections: NCL list
    (shallow -> deep, as in the PyTorch module); x: NCL bottleneck."""
    B = x.shape[0]
    skips = list(reversed(skip_connections))        # deepest first; no XLA ops

    block_dims, flat, scratch = [], [], []
    Lin = x.shape[2]
    for p, skip in zip(params, skips):
        S = p["c1_w"].shape[1]                      # c1_w: (3, S, 3S)
        Lup = 2 * Lin
        crop = skip.shape[2] - Lup
        # PyTorch's center_crop + torch.cat(dim=1) only works for even, >=0 crop.
        assert crop >= 0 and crop % 2 == 0, "center_crop mismatch (PyTorch would also fail)"
        half = crop // 2
        block_dims.append((S, Lin, Lup, half))
        flat += [p["up_w"], p["up_b"], p["c1_w"], p["c1_b"], p["c2_w"], p["c2_b"]]
        scratch += [pltpu.VMEM((3 * S, Lup + 2), jnp.float32),
                    pltpu.VMEM((S, Lup + 2), jnp.float32)]
        Lin = Lup

    S_f, _, L_f, _ = block_dims[-1]
    kernel = functools.partial(_decoder_kernel, B=B, block_dims=tuple(block_dims))
    return pl.pallas_call(
        kernel,
        out_shape=jax.ShapeDtypeStruct((B, S_f, L_f), jnp.float32),
        scratch_shapes=scratch,          # whole arrays in VMEM, no grid, no pipelining
    )(x, *skips, *flat)


# ------------------------- pure-JAX reference path ---------------------------

def _conv1d_same_ref(x_ncl, w, b, relu):            # w: (K, Cout, Cin), b: (Cout, 1)
    K, L = w.shape[0], x_ncl.shape[2]
    pad = (K - 1) // 2
    xp = jnp.pad(x_ncl, ((0, 0), (0, 0), (pad, pad)))
    y = b[None]                                     # (1, Cout, 1)
    for k in range(K):
        y = y + jnp.einsum("oc,bcl->bol", w[k], xp[:, :, k:k + L])
    return jnp.maximum(y, 0.0) if relu else y


def _conv_transpose_ref(x_ncl, w, b):               # k=2, s=2; w: (2, Cout, Cin)
    y0 = jnp.einsum("oc,bcl->bol", w[0], x_ncl) + b[None]
    y1 = jnp.einsum("oc,bcl->bol", w[1], x_ncl) + b[None]
    Bn, Co, L = y0.shape
    return jnp.stack([y0, y1], axis=3).reshape(Bn, Co, 2 * L)


def decoder_forward_ref(params, skip_connections, x):
    for skip, p in zip(reversed(skip_connections), params):
        x = _conv_transpose_ref(x, p["up_w"], p["up_b"])
        crop = skip.shape[2] - x.shape[2]
        half = crop // 2
        if half > 0:
            skip = skip[:, :, half:skip.shape[2] - half]
        x = jnp.concatenate([skip, x], axis=1)
        x = _conv1d_same_ref(x, p["c1_w"], p["c1_b"], True)
        x = _conv1d_same_ref(x, p["c2_w"], p["c2_b"], True)
    return x


# ------------------------------- parameters ----------------------------------

def make_params(key, in_channels_skip_connection, num_decoding_blocks):
    """Weights stored in kernel layout: conv/transpose-conv weights (K, Cout, Cin),
    biases (Cout, 1). Semantically identical to the PyTorch layers."""
    def uni(k, shape, fan_in):
        bound = 1.0 / np.sqrt(fan_in)
        return jax.random.uniform(k, shape, jnp.float32, -bound, bound)

    params = []
    S = in_channels_skip_connection
    for _ in range(num_decoding_blocks):
        keys = jax.random.split(key, 7)
        key = keys[0]
        Cup = 2 * S
        params.append(dict(
            up_w=uni(keys[1], (2, Cup, Cup), Cup * 2),       # ConvTranspose1d(2S,2S,k2,s2)
            up_b=uni(keys[2], (Cup, 1), Cup * 2),
            c1_w=uni(keys[3], (3, S, 3 * S), 3 * S * 3),     # Conv1d(3S, S, k3)
            c1_b=uni(keys[4], (S, 1), 3 * S * 3),
            c2_w=uni(keys[5], (3, S, S), S * 3),             # Conv1d(S, S, k3)
            c2_b=uni(keys[6], (S, 1), S * 3),
        ))
        S //= 2
    return params


# ---------------------------------- main --------------------------------------

if __name__ == "__main__":
    B = 2
    S0 = 8                 # in_channels_skip_connection
    num_blocks = 2
    L0 = 8                 # bottleneck spatial length

    key = jax.random.PRNGKey(0)
    kx, ks1, ks2, kp = jax.random.split(key, 4)

    # PyTorch NCL inputs
    x = jax.random.normal(kx, (B, 2 * S0, L0), jnp.float32)                   # (2, 16, 8)
    skip_shallow = jax.random.normal(ks1, (B, S0 // 2, 4 * L0), jnp.float32)  # (2, 4, 32)
    skip_deep = jax.random.normal(ks2, (B, S0, 2 * L0), jnp.float32)          # (2, 8, 16)
    skip_connections = [skip_shallow, skip_deep]                              # shallow -> deep

    params = make_params(kp, S0, num_blocks)

    fwd = jax.jit(decoder_forward_pallas)
    out = jax.block_until_ready(fwd(params, skip_connections, x))

    ref = decoder_forward_ref(params, skip_connections, x)
    np.testing.assert_allclose(np.asarray(out), np.asarray(ref), atol=1e-4, rtol=1e-4)
    assert out.shape == (B, S0 // 2, 4 * L0)

    print("KERNEL_OK")
</pallas_src>

<mosaic_0001>
module attributes {stable_mosaic.version = 11 : i64} {
  func.func @_decoder_kernel(%arg0: memref<2x16x8xf32, #tpu.memory_space<vmem>>, %arg1: memref<2x8x16xf32, #tpu.memory_space<vmem>>, %arg2: memref<2x4x32xf32, #tpu.memory_space<vmem>>, %arg3: memref<2x16x16xf32, #tpu.memory_space<vmem>>, %arg4: memref<16x1xf32, #tpu.memory_space<vmem>>, %arg5: memref<3x8x24xf32, #tpu.memory_space<vmem>>, %arg6: memref<8x1xf32, #tpu.memory_space<vmem>>, %arg7: memref<3x8x8xf32, #tpu.memory_space<vmem>>, %arg8: memref<8x1xf32, #tpu.memory_space<vmem>>, %arg9: memref<2x8x8xf32, #tpu.memory_space<vmem>>, %arg10: memref<8x1xf32, #tpu.memory_space<vmem>>, %arg11: memref<3x4x12xf32, #tpu.memory_space<vmem>>, %arg12: memref<4x1xf32, #tpu.memory_space<vmem>>, %arg13: memref<3x4x4xf32, #tpu.memory_space<vmem>>, %arg14: memref<4x1xf32, #tpu.memory_space<vmem>>, %arg15: memref<2x4x32xf32, #tpu.memory_space<vmem>>, %arg16: memref<24x18xf32, #tpu.memory_space<vmem>>, %arg17: memref<8x18xf32, #tpu.memory_space<vmem>>, %arg18: memref<12x34xf32, #tpu.memory_space<vmem>>, %arg19: memref<4x34xf32, #tpu.memory_space<vmem>>) attributes {dimension_semantics = [], scalar_prefetch = 0 : i64, scratch_operands = 4 : i64, tpu.core_type = #tpu.core_type<tc>} {
    %c0 = arith.constant 0 : index
    %c0_0 = arith.constant 0 : index
    %c0_1 = arith.constant 0 : index
    %0 = vector.load %arg3[%c0, %c0_0, %c0_1] : memref<2x16x16xf32, #tpu.memory_space<vmem>>, vector<1x16x16xf32>
    %1 = vector.shape_cast %0 : vector<1x16x16xf32> to vector<16x16xf32>
    %c1 = arith.constant 1 : index
    %c0_2 = arith.constant 0 : index
    %c0_3 = arith.constant 0 : index
    %2 = vector.load %arg3[%c1, %c0_2, %c0_3] : memref<2x16x16xf32, #tpu.memory_space<vmem>>, vector<1x16x16xf32>
    %3 = vector.shape_cast %2 : vector<1x16x16xf32> to vector<16x16xf32>
    %c0_4 = arith.constant 0 : index
    %c0_5 = arith.constant 0 : index
    %c0_6 = arith.constant 0 : index
    %4 = vector.load %arg5[%c0_4, %c0_5, %c0_6] : memref<3x8x24xf32, #tpu.memory_space<vmem>>, vector<1x8x24xf32>
    %5 = vector.shape_cast %4 : vector<1x8x24xf32> to vector<8x24xf32>
    %c1_7 = arith.constant 1 : index
    %c0_8 = arith.constant 0 : index
    %c0_9 = arith.constant 0 : index
    %6 = vector.load %arg5[%c1_7, %c0_8, %c0_9] : memref<3x8x24xf32, #tpu.memory_space<vmem>>, vector<1x8x24xf32>
    %7 = vector.shape_cast %6 : vector<1x8x24xf32> to vector<8x24xf32>
    %c2 = arith.constant 2 : index
    %c0_10 = arith.constant 0 : index
    %c0_11 = arith.constant 0 : index
    %8 = vector.load %arg5[%c2, %c0_10, %c0_11] : memref<3x8x24xf32, #tpu.memory_space<vmem>>, vector<1x8x24xf32>
    %9 = vector.shape_cast %8 : vector<1x8x24xf32> to vector<8x24xf32>
    %c0_12 = arith.constant 0 : index
    %c0_13 = arith.constant 0 : index
    %c0_14 = arith.constant 0 : index
    %10 = vector.load %arg7[%c0_12, %c0_13, %c0_14] : memref<3x8x8xf32, #tpu.memory_space<vmem>>, vector<1x8x8xf32>
    %11 = vector.shape_cast %10 : vector<1x8x8xf32> to vector<8x8xf32>
    %c1_15 = arith.constant 1 : index
    %c0_16 = arith.constant 0 : index
    %c0_17 = arith.constant 0 : index
    %12 = vector.load %arg7[%c1_15, %c0_16, %c0_17] : memref<3x8x8xf32, #tpu.memory_space<vmem>>, vector<1x8x8xf32>
    %13 = vector.shape_cast %12 : vector<1x8x8xf32> to vector<8x8xf32>
    %c2_18 = arith.constant 2 : index
    %c0_19 = arith.constant 0 : index
    %c0_20 = arith.constant 0 : index
    %14 = vector.load %arg7[%c2_18, %c0_19, %c0_20] : memref<3x8x8xf32, #tpu.memory_space<vmem>>, vector<1x8x8xf32>
    %15 = vector.shape_cast %14 : vector<1x8x8xf32> to vector<8x8xf32>
    %c0_21 = arith.constant 0 : index
    %c0_22 = arith.constant 0 : index
    %16 = vector.load %arg4[%c0_21, %c0_22] : memref<16x1xf32, #tpu.memory_space<vmem>>, vector<16x1xf32>
    %17 = vector.shape_cast %16 : vector<16x1xf32> to vector<16x1xf32>
    %18 = vector.broadcast %17 : vector<16x1xf32> to vector<16x16xf32>
    %c0_23 = arith.constant 0 : index
    %c0_24 = arith.constant 0 : index
    %19 = vector.load %arg6[%c0_23, %c0_24] : memref<8x1xf32, #tpu.memory_space<vmem>>, vector<8x1xf32>
    %20 = vector.shape_cast %19 : vector<8x1xf32> to vector<8x1xf32>
    %21 = vector.broadcast %20 : vector<8x1xf32> to vector<8x16xf32>
    %c0_25 = arith.constant 0 : index
    %c0_26 = arith.constant 0 : index
    %22 = vector.load %arg8[%c0_25, %c0_26] : memref<8x1xf32, #tpu.memory_space<vmem>>, vector<8x1xf32>
    %23 = vector.shape_cast %22 : vector<8x1xf32> to vector<8x1xf32>
    %24 = vector.broadcast %23 : vector<8x1xf32> to vector<8x16xf32>
    %25 = tpu.iota {dimensions = array<i32: 0>} : vector<8x16xi32>
    %26 = tpu.iota {dimensions = array<i32: 1>} : vector<8x16xi32>
    %c2_i32 = arith.constant 2 : i32
    %27 = vector.broadcast %c2_i32 : i32 to vector<8x16xi32>
    %28 = arith.muli %27, %25 : vector<8x16xi32>
    %29 = arith.cmpi eq, %26, %28 : vector<8x16xi32>
    %30 = arith.extui %29 : vector<8x16xi1> to vector<8x16xi32>
    %31 = arith.sitofp %30 : vector<8x16xi32> to vector<8x16xf32>
    %c2_i32_27 = arith.constant 2 : i32
    %32 = vector.broadcast %c2_i32_27 : i32 to vector<8x16xi32>
    %33 = arith.muli %32, %25 : vector<8x16xi32>
    %c1_i32 = arith.constant 1 : i32
    %34 = vector.broadcast %c1_i32 : i32 to vector<8x16xi32>
    %35 = arith.addi %33, %34 : vector<8x16xi32>
    %36 = arith.cmpi eq, %26, %35 : vector<8x16xi32>
    %37 = arith.extui %36 : vector<8x16xi1> to vector<8x16xi32>
    %38 = arith.sitofp %37 : vector<8x16xi32> to vector<8x16xf32>
    %cst = arith.constant 0.000000e+00 : f32
    %39 = vector.broadcast %cst : f32 to vector<24x18xf32>
    %c0_28 = arith.constant 0 : index
    %c0_29 = arith.constant 0 : index
    %40 = vector.load %arg16[%c0_28, %c0_29] : memref<24x18xf32, #tpu.memory_space<vmem>>, vector<24x18xf32>
    tpu.vector_store %arg16[%c0_28, %c0_29], %39 {strides = array<i32>} : memref<24x18xf32, #tpu.memory_space<vmem>>, vector<24x18xf32>,
    %cst_30 = arith.constant 0.000000e+00 : f32
    %41 = vector.broadcast %cst_30 : f32 to vector<8x18xf32>
    %c0_31 = arith.constant 0 : index
    %c0_32 = arith.constant 0 : index
    %42 = vector.load %arg17[%c0_31, %c0_32] : memref<8x18xf32, #tpu.memory_space<vmem>>, vector<8x18xf32>
    tpu.vector_store %arg17[%c0_31, %c0_32], %41 {strides = array<i32>} : memref<8x18xf32, #tpu.memory_space<vmem>>, vector<8x18xf32>,
    %c0_33 = arith.constant 0 : index
    %c0_34 = arith.constant 0 : index
    %c0_35 = arith.constant 0 : index
    %43 = vector.load %arg9[%c0_33, %c0_34, %c0_35] : memref<2x8x8xf32, #tpu.memory_space<vmem>>, vector<1x8x8xf32>
    %44 = vector.shape_cast %43 : vector<1x8x8xf32> to vector<8x8xf32>
    %c1_36 = arith.constant 1 : index
    %c0_37 = arith.constant 0 : index
    %c0_38 = arith.constant 0 : index
    %45 = vector.load %arg9[%c1_36, %c0_37, %c0_38] : memref<2x8x8xf32, #tpu.memory_space<vmem>>, vector<1x8x8xf32>
    %46 = vector.shape_cast %45 : vector<1x8x8xf32> to vector<8x8xf32>
    %c0_39 = arith.constant 0 : index
    %c0_40 = arith.constant 0 : index
    %c0_41 = arith.constant 0 : index
    %47 = vector.load %arg11[%c0_39, %c0_40, %c0_41] : memref<3x4x12xf32, #tpu.memory_space<vmem>>, vector<1x4x12xf32>
    %48 = vector.shape_cast %47 : vector<1x4x12xf32> to vector<4x12xf32>
    %c1_42 = arith.constant 1 : index
    %c0_43 = arith.constant 0 : index
    %c0_44 = arith.constant 0 : index
    %49 = vector.load %arg11[%c1_42, %c0_43, %c0_44] : memref<3x4x12xf32, #tpu.memory_space<vmem>>, vector<1x4x12xf32>
    %50 = vector.shape_cast %49 : vector<1x4x12xf32> to vector<4x12xf32>
    %c2_45 = arith.constant 2 : index
    %c0_46 = arith.constant 0 : index
    %c0_47 = arith.constant 0 : index
    %51 = vector.load %arg11[%c2_45, %c0_46, %c0_47] : memref<3x4x12xf32, #tpu.memory_space<vmem>>, vector<1x4x12xf32>
    %52 = vector.shape_cast %51 : vector<1x4x12xf32> to vector<4x12xf32>
    %c0_48 = arith.constant 0 : index
    %c0_49 = arith.constant 0 : index
    %c0_50 = arith.constant 0 : index
    %53 = vector.load %arg13[%c0_48, %c0_49, %c0_50] : memref<3x4x4xf32, #tpu.memory_space<vmem>>, vector<1x4x4xf32>
    %54 = vector.shape_cast %53 : vector<1x4x4xf32> to vector<4x4xf32>
    %c1_51 = arith.constant 1 : index
    %c0_52 = arith.constant 0 : index
    %c0_53 = arith.constant 0 : index
    %55 = vector.load %arg13[%c1_51, %c0_52, %c0_53] : memref<3x4x4xf32, #tpu.memory_space<vmem>>, vector<1x4x4xf32>
    %56 = vector.shape_cast %55 : vector<1x4x4xf32> to vector<4x4xf32>
    %c2_54 = arith.constant 2 : index
    %c0_55 = arith.constant 0 : index
    %c0_56 = arith.constant 0 : index
    %57 = vector.load %arg13[%c2_54, %c0_55, %c0_56] : memref<3x4x4xf32, #tpu.memory_space<vmem>>, vector<1x4x4xf32>
    %58 = vector.shape_cast %57 : vector<1x4x4xf32> to vector<4x4xf32>
    %c0_57 = arith.constant 0 : index
    %c0_58 = arith.constant 0 : index
    %59 = vector.load %arg10[%c0_57, %c0_58] : memref<8x1xf32, #tpu.memory_space<vmem>>, vector<8x1xf32>
    %60 = vector.shape_cast %59 : vector<8x1xf32> to vector<8x1xf32>
    %61 = vector.broadcast %60 : vector<8x1xf32> to vector<8x32xf32>
    %c0_59 = arith.constant 0 : index
    %c0_60 = arith.constant 0 : index
    %62 = vector.load %arg12[%c0_59, %c0_60] : memref<4x1xf32, #tpu.memory_space<vmem>>, vector<4x1xf32>
    %63 = vector.shape_cast %62 : vector<4x1xf32> to vector<4x1xf32>
    %64 = vector.broadcast %63 : vector<4x1xf32> to vector<4x32xf32>
    %c0_61 = arith.constant 0 : index
    %c0_62 = arith.constant 0 : index
    %65 = vector.load %arg14[%c0_61, %c0_62] : memref<4x1xf32, #tpu.memory_space<vmem>>, vector<4x1xf32>
    %66 = vector.shape_cast %65 : vector<4x1xf32> to vector<4x1xf32>
    %67 = vector.broadcast %66 : vector<4x1xf32> to vector<4x32xf32>
    %68 = tpu.iota {dimensions = array<i32: 0>} : vector<16x32xi32>
    %69 = tpu.iota {dimensions = array<i32: 1>} : vector<16x32xi32>
    %c2_i32_63 = arith.constant 2 : i32
    %70 = vector.broadcast %c2_i32_63 : i32 to vector<16x32xi32>
    %71 = arith.muli %70, %68 : vector<16x32xi32>
    %72 = arith.cmpi eq, %69, %71 : vector<16x32xi32>
    %73 = arith.extui %72 : vector<16x32xi1> to vector<16x32xi32>
    %74 = arith.sitofp %73 : vector<16x32xi32> to vector<16x32xf32>
    %c2_i32_64 = arith.constant 2 : i32
    %75 = vector.broadcast %c2_i32_64 : i32 to vector<16x32xi32>
    %76 = arith.muli %75, %68 : vector<16x32xi32>
    %c1_i32_65 = arith.constant 1 : i32
    %77 = vector.broadcast %c1_i32_65 : i32 to vector<16x32xi32>
    %78 = arith.addi %76, %77 : vector<16x32xi32>
    %79 = arith.cmpi eq, %69, %78 : vector<16x32xi32>
    %80 = arith.extui %79 : vector<16x32xi1> to vector<16x32xi32>
    %81 = arith.sitofp %80 : vector<16x32xi32> to vector<16x32xf32>
    %cst_66 = arith.constant 0.000000e+00 : f32
    %82 = vector.broadcast %cst_66 : f32 to vector<12x34xf32>
    %c0_67 = arith.constant 0 : index
    %c0_68 = arith.constant 0 : index
    %83 = vector.load %arg18[%c0_67, %c0_68] : memref<12x34xf32, #tpu.memory_space<vmem>>, vector<12x34xf32>
    tpu.vector_store %arg18[%c0_67, %c0_68], %82 {strides = array<i32>} : memref<12x34xf32, #tpu.memory_space<vmem>>, vector<12x34xf32>,
    %cst_69 = arith.constant 0.000000e+00 : f32
    %84 = vector.broadcast %cst_69 : f32 to vector<4x34xf32>
    %c0_70 = arith.constant 0 : index
    %c0_71 = arith.constant 0 : index
    %85 = vector.load %arg19[%c0_70, %c0_71] : memref<4x34xf32, #tpu.memory_space<vmem>>, vector<4x34xf32>
    tpu.vector_store %arg19[%c0_70, %c0_71], %84 {strides = array<i32>} : memref<4x34xf32, #tpu.memory_space<vmem>>, vector<4x34xf32>,
    %c0_72 = arith.constant 0 : index
    %c0_73 = arith.constant 0 : index
    %c0_74 = arith.constant 0 : index
    %86 = vector.load %arg0[%c0_72, %c0_73, %c0_74] : memref<2x16x8xf32, #tpu.memory_space<vmem>>, vector<1x16x8xf32>
    %87 = vector.shape_cast %86 : vector<1x16x8xf32> to vector<16x8xf32>
    %cst_75 = arith.constant dense<0.000000e+00> : vector<16x8xf32>
    %88 = tpu.matmul %1, %87, %cst_75 {dimension_numbers = #tpu.dot_dimension_numbers<[1], [0], [0], [1], [0, 0, 1, 1], [], []>} : vector<16x16xf32>, vector<16x8xf32>, vector<16x8xf32> -> vector<16x8xf32>
    %cst_76 = arith.constant dense<0.000000e+00> : vector<16x8xf32>
    %89 = tpu.matmul %3, %87, %cst_76 {dimension_numbers = #tpu.dot_dimension_numbers<[1], [0], [0], [1], [0, 0, 1, 1], [], []>} : vector<16x16xf32>, vector<16x8xf32>, vector<16x8xf32> -> vector<16x8xf32>
    %cst_77 = arith.constant dense<0.000000e+00> : vector<16x16xf32>
    %90 = tpu.matmul %88, %31, %cst_77 {dimension_numbers = #tpu.dot_dimension_numbers<[1], [0], [0], [1], [0, 0, 1, 1], [], []>} : vector<16x8xf32>, vector<8x16xf32>, vector<16x16xf32> -> vector<16x16xf32>
    %cst_78 = arith.constant dense<0.000000e+00> : vector<16x16xf32>
    %91 = tpu.matmul %89, %38, %cst_78 {dimension_numbers = #tpu.dot_dimension_numbers<[1], [0], [0], [1], [0, 0, 1, 1], [], []>} : vector<16x8xf32>, vector<8x16xf32>, vector<16x16xf32> -> vector<16x16xf32>
    %92 = arith.addf %90, %91 : vector<16x16xf32>
    %93 = arith.addf %92, %18 : vector<16x16xf32>
    %c0_79 = arith.constant 0 : index
    %c0_80 = arith.constant 0 : index
    %c0_81 = arith.constant 0 : index
    %94 = vector.load %arg1[%c0_79, %c0_80, %c0_81] : memref<2x8x16xf32, #tpu.memory_space<vmem>>, vector<1x8x16xf32>
    %95 = vector.shape_cast %94 : vector<1x8x16xf32> to vector<8x16xf32>
    %c0_82 = arith.constant 0 : index
    %c1_83 = arith.constant 1 : index
    %96 = vector.load %arg16[%c0_82, %c1_83] : memref<24x18xf32, #tpu.memory_space<vmem>>, vector<8x16xf32>
    tpu.vector_store %arg16[%c0_82, %c1_83], %95 {strides = array<i32>} : memref<24x18xf32, #tpu.memory_space<vmem>>, vector<8x16xf32>,
    %c8 = arith.constant 8 : index
    %c1_84 = arith.constant 1 : index
    %97 = vector.load %arg16[%c8, %c1_84] : memref<24x18xf32, #tpu.memory_space<vmem>>, vector<16x16xf32>
    tpu.vector_store %arg16[%c8, %c1_84], %93 {strides = array<i32>} : memref<24x18xf32, #tpu.memory_space<vmem>>, vector<16x16xf32>,
    %c0_85 = arith.constant 0 : index
    %c0_86 = arith.constant 0 : index
    %98 = vector.load %arg16[%c0_85, %c0_86] : memref<24x18xf32, #tpu.memory_space<vmem>>, vector<24x16xf32>
    %cst_87 = arith.constant dense<0.000000e+00> : vector<8x16xf32>
    %99 = tpu.matmul %5, %98, %cst_87 {dimension_numbers = #tpu.dot_dimension_numbers<[1], [0], [0], [1], [0, 0, 1, 1], [], []>} : vector<8x24xf32>, vector<24x16xf32>, vector<8x16xf32> -> vector<8x16xf32>
    %100 = arith.addf %21, %99 : vector<8x16xf32>
    %c0_88 = arith.constant 0 : index
    %c1_89 = arith.constant 1 : index
    %101 = vector.load %arg16[%c0_88, %c1_89] : memref<24x18xf32, #tpu.memory_space<vmem>>, vector<24x16xf32>
    %cst_90 = arith.constant dense<0.000000e+00> : vector<8x16xf32>
    %102 = tpu.matmul %7, %101, %cst_90 {dimension_numbers = #tpu.dot_dimension_numbers<[1], [0], [0], [1], [0, 0, 1, 1], [], []>} : vector<8x24xf32>, vector<24x16xf32>, vector<8x16xf32> -> vector<8x16xf32>
    %103 = arith.addf %100, %102 : vector<8x16xf32>
    %c0_91 = arith.constant 0 : index
    %c2_92 = arith.constant 2 : index
    %104 = vector.load %arg16[%c0_91, %c2_92] : memref<24x18xf32, #tpu.memory_space<vmem>>, vector<24x16xf32>
    %cst_93 = arith.constant dense<0.000000e+00> : vector<8x16xf32>
    %105 = tpu.matmul %9, %104, %cst_93 {dimension_numbers = #tpu.dot_dimension_numbers<[1], [0], [0], [1], [0, 0, 1, 1], [], []>} : vector<8x24xf32>, vector<24x16xf32>, vector<8x16xf32> -> vector<8x16xf32>
    %106 = arith.addf %103, %105 : vector<8x16xf32>
    %cst_94 = arith.constant 0.000000e+00 : f32
    %107 = vector.broadcast %cst_94 : f32 to vector<8x16xf32>
    %108 = arith.maximumf %106, %107 : vector<8x16xf32>
    %c0_95 = arith.constant 0 : index
    %c1_96 = arith.constant 1 : index
    %109 = vector.load %arg17[%c0_95, %c1_96] : memref<8x18xf32, #tpu.memory_space<vmem>>, vector<8x16xf32>
    tpu.vector_store %arg17[%c0_95, %c1_96], %108 {strides = array<i32>} : memref<8x18xf32, #tpu.memory_space<vmem>>, vector<8x16xf32>,
    %c0_97 = arith.constant 0 : index
    %c0_98 = arith.constant 0 : index
    %110 = vector.load %arg17[%c0_97, %c0_98] : memref<8x18xf32, #tpu.memory_space<vmem>>, vector<8x16xf32>
    %cst_99 = arith.constant dense<0.000000e+00> : vector<8x16xf32>
    %111 = tpu.matmul %11, %110, %cst_99 {dimension_numbers = #tpu.dot_dimension_numbers<[1], [0], [0], [1], [0, 0, 1, 1], [], []>} : vector<8x8xf32>, vector<8x16xf32>, vector<8x16xf32> -> vector<8x16xf32>
    %112 = arith.addf %24, %111 : vector<8x16xf32>
    %c0_100 = arith.constant 0 : index
    %c1_101 = arith.constant 1 : index
    %113 = vector.load %arg17[%c0_100, %c1_101] : memref<8x18xf32, #tpu.memory_space<vmem>>, vector<8x16xf32>
    %cst_102 = arith.constant dense<0.000000e+00> : vector<8x16xf32>
    %114 = tpu.matmul %13, %113, %cst_102 {dimension_numbers = #tpu.dot_dimension_numbers<[1], [0], [0], [1], [0, 0, 1, 1], [], []>} : vector<8x8xf32>, vector<8x16xf32>, vector<8x16xf32> -> vector<8x16xf32>
    %115 = arith.addf %112, %114 : vector<8x16xf32>
    %c0_103 = arith.constant 0 : index
    %c2_104 = arith.constant 2 : index
    %116 = vector.load %arg17[%c0_103, %c2_104] : memref<8x18xf32, #tpu.memory_space<vmem>>, vector<8x16xf32>
    %cst_105 = arith.constant dense<0.000000e+00> : vector<8x16xf32>
    %117 = tpu.matmul %15, %116, %cst_105 {dimension_numbers = #tpu.dot_dimension_numbers<[1], [0], [0], [1], [0, 0, 1, 1], [], []>} : vector<8x8xf32>, vector<8x16xf32>, vector<8x16xf32> -> vector<8x16xf32>
    %118 = arith.addf %115, %117 : vector<8x16xf32>
    %cst_106 = arith.constant 0.000000e+00 : f32
    %119 = vector.broadcast %cst_106 : f32 to vector<8x16xf32>
    %120 = arith.maximumf %118, %119 : vector<8x16xf32>
    %cst_107 = arith.constant dense<0.000000e+00> : vector<8x16xf32>
    %121 = tpu.matmul %44, %120, %cst_107 {dimension_numbers = #tpu.dot_dimension_numbers<[1], [0], [0], [1], [0, 0, 1, 1], [], []>} : vector<8x8xf32>, vector<8x16xf32>, vector<8x16xf32> -> vector<8x16xf32>
    %cst_108 = arith.constant dense<0.000000e+00> : vector<8x16xf32>
    %122 = tpu.matmul %46, %120, %cst_108 {dimension_numbers = #tpu.dot_dimension_numbers<[1], [0], [0], [1], [0, 0, 1, 1], [], []>} : vector<8x8xf32>, vector<8x16xf32>, vector<8x16xf32> -> vector<8x16xf32>
    %cst_109 = arith.constant dense<0.000000e+00> : vector<8x32xf32>
    %123 = tpu.matmul %121, %74, %cst_109 {dimension_numbers = #tpu.dot_dimension_numbers<[1], [0], [0], [1], [0, 0, 1, 1], [], []>} : vector<8x16xf32>, vector<16x32xf32>, vector<8x32xf32> -> vector<8x32xf32>
    %cst_110 = arith.constant dense<0.000000e+00> : vector<8x32xf32>
    %124 = tpu.matmul %122, %81, %cst_110 {dimension_numbers = #tpu.dot_dimension_numbers<[1], [0], [0], [1], [0, 0, 1, 1], [], []>} : vector<8x16xf32>, vector<16x32xf32>, vector<8x32xf32> -> vector<8x32xf32>
    %125 = arith.addf %123, %124 : vector<8x32xf32>
    %126 = arith.addf %125, %61 : vector<8x32xf32>
    %c0_111 = arith.constant 0 : index
    %c0_112 = arith.constant 0 : index
    %c0_113 = arith.constant 0 : index
    %127 = vector.load %arg2[%c0_111, %c0_112, %c0_113] : memref<2x4x32xf32, #tpu.memory_space<vmem>>, vector<1x4x32xf32>
    %128 = vector.shape_cast %127 : vector<1x4x32xf32> to vector<4x32xf32>
    %c0_114 = arith.constant 0 : index
    %c1_115 = arith.constant 1 : index
    %129 = vector.load %arg18[%c0_114, %c1_115] : memref<12x34xf32, #tpu.memory_space<vmem>>, vector<4x32xf32>
    tpu.vector_store %arg18[%c0_114, %c1_115], %128 {strides = array<i32>} : memref<12x34xf32, #tpu.memory_space<vmem>>, vector<4x32xf32>,
    %c4 = arith.constant 4 : index
    %c1_116 = arith.constant 1 : index
    %130 = vector.load %arg18[%c4, %c1_116] : memref<12x34xf32, #tpu.memory_space<vmem>>, vector<8x32xf32>
    tpu.vector_store %arg18[%c4, %c1_116], %126 {strides = array<i32>} : memref<12x34xf32, #tpu.memory_space<vmem>>, vector<8x32xf32>,
    %c0_117 = arith.constant 0 : index
    %c0_118 = arith.constant 0 : index
    %131 = vector.load %arg18[%c0_117, %c0_118] : memref<12x34xf32, #tpu.memory_space<vmem>>, vector<12x32xf32>
    %cst_119 = arith.constant dense<0.000000e+00> : vector<4x32xf32>
    %132 = tpu.matmul %48, %131, %cst_119 {dimension_numbers = #tpu.dot_dimension_numbers<[1], [0], [0], [1], [0, 0, 1, 1], [], []>} : vector<4x12xf32>, vector<12x32xf32>, vector<4x32xf32> -> vector<4x32xf32>
    %133 = arith.addf %64, %132 : vector<4x32xf32>
    %c0_120 = arith.constant 0 : index
    %c1_121 = arith.constant 1 : index
    %134 = vector.load %arg18[%c0_120, %c1_121] : memref<12x34xf32, #tpu.memory_space<vmem>>, vector<12x32xf32>
    %cst_122 = arith.constant dense<0.000000e+00> : vector<4x32xf32>
    %135 = tpu.matmul %50, %134, %cst_122 {dimension_numbers = #tpu.dot_dimension_numbers<[1], [0], [0], [1], [0, 0, 1, 1], [], []>} : vector<4x12xf32>, vector<12x32xf32>, vector<4x32xf32> -> vector<4x32xf32>
    %136 = arith.addf %133, %135 : vector<4x32xf32>
    %c0_123 = arith.constant 0 : index
    %c2_124 = arith.constant 2 : index
    %137 = vector.load %arg18[%c0_123, %c2_124] : memref<12x34xf32, #tpu.memory_space<vmem>>, vector<12x32xf32>
    %cst_125 = arith.constant dense<0.000000e+00> : vector<4x32xf32>
    %138 = tpu.matmul %52, %137, %cst_125 {dimension_numbers = #tpu.dot_dimension_numbers<[1], [0], [0], [1], [0, 0, 1, 1], [], []>} : vector<4x12xf32>, vector<12x32xf32>, vector<4x32xf32> -> vector<4x32xf32>
    %139 = arith.addf %136, %138 : vector<4x32xf32>
    %cst_126 = arith.constant 0.000000e+00 : f32
    %140 = vector.broadcast %cst_126 : f32 to vector<4x32xf32>
    %141 = arith.maximumf %139, %140 : vector<4x32xf32>
    %c0_127 = arith.constant 0 : index
    %c1_128 = arith.constant 1 : index
    %142 = vector.load %arg19[%c0_127, %c1_128] : memref<4x34xf32, #tpu.memory_space<vmem>>, vector<4x32xf32>
    tpu.vector_store %arg19[%c0_127, %c1_128], %141 {strides = array<i32>} : memref<4x34xf32, #tpu.memory_space<vmem>>, vector<4x32xf32>,
    %c0_129 = arith.constant 0 : index
    %c0_130 = arith.constant 0 : index
    %143 = vector.load %arg19[%c0_129, %c0_130] : memref<4x34xf32, #tpu.memory_space<vmem>>, vector<4x32xf32>
    %cst_131 = arith.constant dense<0.000000e+00> : vector<4x32xf32>
    %144 = tpu.matmul %54, %143, %cst_131 {dimension_numbers = #tpu.dot_dimension_numbers<[1], [0], [0], [1], [0, 0, 1, 1], [], []>} : vector<4x4xf32>, vector<4x32xf32>, vector<4x32xf32> -> vector<4x32xf32>
    %145 = arith.addf %67, %144 : vector<4x32xf32>
    %c0_132 = arith.constant 0 : index
    %c1_133 = arith.constant 1 : index
    %146 = vector.load %arg19[%c0_132, %c1_133] : memref<4x34xf32, #tpu.memory_space<vmem>>, vector<4x32xf32>
    %cst_134 = arith.constant dense<0.000000e+00> : vector<4x32xf32>
    %147 = tpu.matmul %56, %146, %cst_134 {dimension_numbers = #tpu.dot_dimension_numbers<[1], [0], [0], [1], [0, 0, 1, 1], [], []>} : vector<4x4xf32>, vector<4x32xf32>, vector<4x32xf32> -> vector<4x32xf32>
    %148 = arith.addf %145, %147 : vector<4x32xf32>
    %c0_135 = arith.constant 0 : index
    %c2_136 = arith.constant 2 : index
    %149 = vector.load %arg19[%c0_135, %c2_136] : memref<4x34xf32, #tpu.memory_space<vmem>>, vector<4x32xf32>
    %cst_137 = arith.constant dense<0.000000e+00> : vector<4x32xf32>
    %150 = tpu.matmul %58, %149, %cst_137 {dimension_numbers = #tpu.dot_dimension_numbers<[1], [0], [0], [1], [0, 0, 1, 1], [], []>} : vector<4x4xf32>, vector<4x32xf32>, vector<4x32xf32> -> vector<4x32xf32>
    %151 = arith.addf %148, %150 : vector<4x32xf32>
    %cst_138 = arith.constant 0.000000e+00 : f32
    %152 = vector.broadcast %cst_138 : f32 to vector<4x32xf32>
    %153 = arith.maximumf %151, %152 : vector<4x32xf32>
    %c0_139 = arith.constant 0 : index
    %c0_140 = arith.constant 0 : index
    %c0_141 = arith.constant 0 : index
    %154 = vector.load %arg15[%c0_139, %c0_140, %c0_141] : memref<2x4x32xf32, #tpu.memory_space<vmem>>, vector<1x4x32xf32>
    %155 = vector.shape_cast %154 : vector<1x4x32xf32> to vector<4x32xf32>
    %156 = vector.shape_cast %153 : vector<4x32xf32> to vector<1x4x32xf32>
    tpu.vector_store %arg15[%c0_139, %c0_140, %c0_141], %156 {strides = array<i32>} : memref<2x4x32xf32, #tpu.memory_space<vmem>>, vector<1x4x32xf32>,
    %c1_142 = arith.constant 1 : index
    %c0_143 = arith.constant 0 : index
    %c0_144 = arith.constant 0 : index
    %157 = vector.load %arg0[%c1_142, %c0_143, %c0_144] : memref<2x16x8xf32, #tpu.memory_space<vmem>>, vector<1x16x8xf32>
    %158 = vector.shape_cast %157 : vector<1x16x8xf32> to vector<16x8xf32>
    %cst_145 = arith.constant dense<0.000000e+00> : vector<16x8xf32>
    %159 = tpu.matmul %1, %158, %cst_145 {dimension_numbers = #tpu.dot_dimension_numbers<[1], [0], [0], [1], [0, 0, 1, 1], [], []>} : vector<16x16xf32>, vector<16x8xf32>, vector<16x8xf32> -> vector<16x8xf32>
    %cst_146 = arith.constant dense<0.000000e+00> : vector<16x8xf32>
    %160 = tpu.matmul %3, %158, %cst_146 {dimension_numbers = #tpu.dot_dimension_numbers<[1], [0], [0], [1], [0, 0, 1, 1], [], []>} : vector<16x16xf32>, vector<16x8xf32>, vector<16x8xf32> -> vector<16x8xf32>
    %cst_147 = arith.constant dense<0.000000e+00> : vector<16x16xf32>
    %161 = tpu.matmul %159, %31, %cst_147 {dimension_numbers = #tpu.dot_dimension_numbers<[1], [0], [0], [1], [0, 0, 1, 1], [], []>} : vector<16x8xf32>, vector<8x16xf32>, vector<16x16xf32> -> vector<16x16xf32>
    %cst_148 = arith.constant dense<0.000000e+00> : vector<16x16xf32>
    %162 = tpu.matmul %160, %38, %cst_148 {dimension_numbers = #tpu.dot_dimension_numbers<[1], [0], [0], [1], [0, 0, 1, 1], [], []>} : vector<16x8xf32>, vector<8x16xf32>, vector<16x16xf32> -> vector<16x16xf32>
    %163 = arith.addf %161, %162 : vector<16x16xf32>
    %164 = arith.addf %163, %18 : vector<16x16xf32>
    %c1_149 = arith.constant 1 : index
    %c0_150 = arith.constant 0 : index
    %c0_151 = arith.constant 0 : index
    %165 = vector.load %arg1[%c1_149, %c0_150, %c0_151] : memref<2x8x16xf32, #tpu.memory_space<vmem>>, vector<1x8x16xf32>
    %166 = vector.shape_cast %165 : vector<1x8x16xf32> to vector<8x16xf32>
    %c0_152 = arith.constant 0 : index
    %c1_153 = arith.constant 1 : index
    %167 = vector.load %arg16[%c0_152, %c1_153] : memref<24x18xf32, #tpu.memory_space<vmem>>, vector<8x16xf32>
    tpu.vector_store %arg16[%c0_152, %c1_153], %166 {strides = array<i32>} : memref<24x18xf32, #tpu.memory_space<vmem>>, vector<8x16xf32>,
    %c8_154 = arith.constant 8 : index
    %c1_155 = arith.constant 1 : index
    %168 = vector.load %arg16[%c8_154, %c1_155] : memref<24x18xf32, #tpu.memory_space<vmem>>, vector<16x16xf32>
    tpu.vector_store %arg16[%c8_154, %c1_155], %164 {strides = array<i32>} : memref<24x18xf32, #tpu.memory_space<vmem>>, vector<16x16xf32>,
    %c0_156 = arith.constant 0 : index
    %c0_157 = arith.constant 0 : index
    %169 = vector.load %arg16[%c0_156, %c0_157] : memref<24x18xf32, #tpu.memory_space<vmem>>, vector<24x16xf32>
    %cst_158 = arith.constant dense<0.000000e+00> : vector<8x16xf32>
    %170 = tpu.matmul %5, %169, %cst_158 {dimension_numbers = #tpu.dot_dimension_numbers<[1], [0], [0], [1], [0, 0, 1, 1], [], []>} : vector<8x24xf32>, vector<24x16xf32>, vector<8x16xf32> -> vector<8x16xf32>
    %171 = arith.addf %21, %170 : vector<8x16xf32>
    %c0_159 = arith.constant 0 : index
    %c1_160 = arith.constant 1 : index
    %172 = vector.load %arg16[%c0_159, %c1_160] : memref<24x18xf32, #tpu.memory_space<vmem>>, vector<24x16xf32>
    %cst_161 = arith.constant dense<0.000000e+00> : vector<8x16xf32>
    %173 = tpu.matmul %7, %172, %cst_161 {dimension_numbers = #tpu.dot_dimension_numbers<[1], [0], [0], [1], [0, 0, 1, 1], [], []>} : vector<8x24xf32>, vector<24x16xf32>, vector<8x16xf32> -> vector<8x16xf32>
    %174 = arith.addf %171, %173 : vector<8x16xf32>
    %c0_162 = arith.constant 0 : index
    %c2_163 = arith.constant 2 : index
    %175 = vector.load %arg16[%c0_162, %c2_163] : memref<24x18xf32, #tpu.memory_space<vmem>>, vector<24x16xf32>
    %cst_164 = arith.constant dense<0.000000e+00> : vector<8x16xf32>
    %176 = tpu.matmul %9, %175, %cst_164 {dimension_numbers = #tpu.dot_dimension_numbers<[1], [0], [0], [1], [0, 0, 1, 1], [], []>} : vector<8x24xf32>, vector<24x16xf32>, vector<8x16xf32> -> vector<8x16xf32>
    %177 = arith.addf %174, %176 : vector<8x16xf32>
    %cst_165 = arith.constant 0.000000e+00 : f32
    %178 = vector.broadcast %cst_165 : f32 to vector<8x16xf32>
    %179 = arith.maximumf %177, %178 : vector<8x16xf32>
    %c0_166 = arith.constant 0 : index
    %c1_167 = arith.constant 1 : index
    %180 = vector.load %arg17[%c0_166, %c1_167] : memref<8x18xf32, #tpu.memory_space<vmem>>, vector<8x16xf32>
    tpu.vector_store %arg17[%c0_166, %c1_167], %179 {strides = array<i32>} : memref<8x18xf32, #tpu.memory_space<vmem>>, vector<8x16xf32>,
    %c0_168 = arith.constant 0 : index
    %c0_169 = arith.constant 0 : index
    %181 = vector.load %arg17[%c0_168, %c0_169] : memref<8x18xf32, #tpu.memory_space<vmem>>, vector<8x16xf32>
    %cst_170 = arith.constant dense<0.000000e+00> : vector<8x16xf32>
    %182 = tpu.matmul %11, %181, %cst_170 {dimension_numbers = #tpu.dot_dimension_numbers<[1], [0], [0], [1], [0, 0, 1, 1], [], []>} : vector<8x8xf32>, vector<8x16xf32>, vector<8x16xf32> -> vector<8x16xf32>
    %183 = arith.addf %24, %182 : vector<8x16xf32>
    %c0_171 = arith.constant 0 : index
    %c1_172 = arith.constant 1 : index
    %184 = vector.load %arg17[%c0_171, %c1_172] : memref<8x18xf32, #tpu.memory_space<vmem>>, vector<8x16xf32>
    %cst_173 = arith.constant dense<0.000000e+00> : vector<8x16xf32>
    %185 = tpu.matmul %13, %184, %cst_173 {dimension_numbers = #tpu.dot_dimension_numbers<[1], [0], [0], [1], [0, 0, 1, 1], [], []>} : vector<8x8xf32>, vector<8x16xf32>, vector<8x16xf32> -> vector<8x16xf32>
    %186 = arith.addf %183, %185 : vector<8x16xf32>
    %c0_174 = arith.constant 0 : index
    %c2_175 = arith.constant 2 : index
    %187 = vector.load %arg17[%c0_174, %c2_175] : memref<8x18xf32, #tpu.memory_space<vmem>>, vector<8x16xf32>
    %cst_176 = arith.constant dense<0.000000e+00> : vector<8x16xf32>
    %188 = tpu.matmul %15, %187, %cst_176 {dimension_numbers = #tpu.dot_dimension_numbers<[1], [0], [0], [1], [0, 0, 1, 1], [], []>} : vector<8x8xf32>, vector<8x16xf32>, vector<8x16xf32> -> vector<8x16xf32>
    %189 = arith.addf %186, %188 : vector<8x16xf32>
    %cst_177 = arith.constant 0.000000e+00 : f32
    %190 = vector.broadcast %cst_177 : f32 to vector<8x16xf32>
    %191 = arith.maximumf %189, %190 : vector<8x16xf32>
    %cst_178 = arith.constant dense<0.000000e+00> : vector<8x16xf32>
    %192 = tpu.matmul %44, %191, %cst_178 {dimension_numbers = #tpu.dot_dimension_numbers<[1], [0], [0], [1], [0, 0, 1, 1], [], []>} : vector<8x8xf32>, vector<8x16xf32>, vector<8x16xf32> -> vector<8x16xf32>
    %cst_179 = arith.constant dense<0.000000e+00> : vector<8x16xf32>
    %193 = tpu.matmul %46, %191, %cst_179 {dimension_numbers = #tpu.dot_dimension_numbers<[1], [0], [0], [1], [0, 0, 1, 1], [], []>} : vector<8x8xf32>, vector<8x16xf32>, vector<8x16xf32> -> vector<8x16xf32>
    %cst_180 = arith.constant dense<0.000000e+00> : vector<8x32xf32>
    %194 = tpu.matmul %192, %74, %cst_180 {dimension_numbers = #tpu.dot_dimension_numbers<[1], [0], [0], [1], [0, 0, 1, 1], [], []>} : vector<8x16xf32>, vector<16x32xf32>, vector<8x32xf32> -> vector<8x32xf32>
    %cst_181 = arith.constant dense<0.000000e+00> : vector<8x32xf32>
    %195 = tpu.matmul %193, %81, %cst_181 {dimension_numbers = #tpu.dot_dimension_numbers<[1], [0], [0], [1], [0, 0, 1, 1], [], []>} : vector<8x16xf32>, vector<16x32xf32>, vector<8x32xf32> -> vector<8x32xf32>
    %196 = arith.addf %194, %195 : vector<8x32xf32>
    %197 = arith.addf %196, %61 : vector<8x32xf32>
    %c1_182 = arith.constant 1 : index
    %c0_183 = arith.constant 0 : index
    %c0_184 = arith.constant 0 : index
    %198 = vector.load %arg2[%c1_182, %c0_183, %c0_184] : memref<2x4x32xf32, #tpu.memory_space<vmem>>, vector<1x4x32xf32>
    %199 = vector.shape_cast %198 : vector<1x4x32xf32> to vector<4x32xf32>
    %c0_185 = arith.constant 0 : index
    %c1_186 = arith.constant 1 : index
    %200 = vector.load %arg18[%c0_185, %c1_186] : memref<12x34xf32, #tpu.memory_space<vmem>>, vector<4x32xf32>
    tpu.vector_store %arg18[%c0_185, %c1_186], %199 {strides = array<i32>} : memref<12x34xf32, #tpu.memory_space<vmem>>, vector<4x32xf32>,
    %c4_187 = arith.constant 4 : index
    %c1_188 = arith.constant 1 : index
    %201 = vector.load %arg18[%c4_187, %c1_188] : memref<12x34xf32, #tpu.memory_space<vmem>>, vector<8x32xf32>
    tpu.vector_store %arg18[%c4_187, %c1_188], %197 {strides = array<i32>} : memref<12x34xf32, #tpu.memory_space<vmem>>, vector<8x32xf32>,
    %c0_189 = arith.constant 0 : index
    %c0_190 = arith.constant 0 : index
    %202 = vector.load %arg18[%c0_189, %c0_190] : memref<12x34xf32, #tpu.memory_space<vmem>>, vector<12x32xf32>
    %cst_191 = arith.constant dense<0.000000e+00> : vector<4x32xf32>
    %203 = tpu.matmul %48, %202, %cst_191 {dimension_numbers = #tpu.dot_dimension_numbers<[1], [0], [0], [1], [0, 0, 1, 1], [], []>} : vector<4x12xf32>, vector<12x32xf32>, vector<4x32xf32> -> vector<4x32xf32>
    %204 = arith.addf %64, %203 : vector<4x32xf32>
    %c0_192 = arith.constant 0 : index
    %c1_193 = arith.constant 1 : index
    %205 = vector.load %arg18[%c0_192, %c1_193] : memref<12x34xf32, #tpu.memory_space<vmem>>, vector<12x32xf32>
    %cst_194 = arith.constant dense<0.000000e+00> : vector<4x32xf32>
    %206 = tpu.matmul %50, %205, %cst_194 {dimension_numbers = #tpu.dot_dimension_numbers<[1], [0], [0], [1], [0, 0, 1, 1], [], []>} : vector<4x12xf32>, vector<12x32xf32>, vector<4x32xf32> -> vector<4x32xf32>
    %207 = arith.addf %204, %206 : vector<4x32xf32>
    %c0_195 = arith.constant 0 : index
    %c2_196 = arith.constant 2 : index
    %208 = vector.load %arg18[%c0_195, %c2_196] : memref<12x34xf32, #tpu.memory_space<vmem>>, vector<12x32xf32>
    %cst_197 = arith.constant dense<0.000000e+00> : vector<4x32xf32>
    %209 = tpu.matmul %52, %208, %cst_197 {dimension_numbers = #tpu.dot_dimension_numbers<[1], [0], [0], [1], [0, 0, 1, 1], [], []>} : vector<4x12xf32>, vector<12x32xf32>, vector<4x32xf32> -> vector<4x32xf32>
    %210 = arith.addf %207, %209 : vector<4x32xf32>
    %cst_198 = arith.constant 0.000000e+00 : f32
    %211 = vector.broadcast %cst_198 : f32 to vector<4x32xf32>
    %212 = arith.maximumf %210, %211 : vector<4x32xf32>
    %c0_199 = arith.constant 0 : index
    %c1_200 = arith.constant 1 : index
    %213 = vector.load %arg19[%c0_199, %c1_200] : memref<4x34xf32, #tpu.memory_space<vmem>>, vector<4x32xf32>
    tpu.vector_store %arg19[%c0_199, %c1_200], %212 {strides = array<i32>} : memref<4x34xf32, #tpu.memory_space<vmem>>, vector<4x32xf32>,
    %c0_201 = arith.constant 0 : index
    %c0_202 = arith.constant 0 : index
    %214 = vector.load %arg19[%c0_201, %c0_202] : memref<4x34xf32, #tpu.memory_space<vmem>>, vector<4x32xf32>
    %cst_203 = arith.constant dense<0.000000e+00> : vector<4x32xf32>
    %215 = tpu.matmul %54, %214, %cst_203 {dimension_numbers = #tpu.dot_dimension_numbers<[1], [0], [0], [1], [0, 0, 1, 1], [], []>} : vector<4x4xf32>, vector<4x32xf32>, vector<4x32xf32> -> vector<4x32xf32>
    %216 = arith.addf %67, %215 : vector<4x32xf32>
    %c0_204 = arith.constant 0 : index
    %c1_205 = arith.constant 1 : index
    %217 = vector.load %arg19[%c0_204, %c1_205] : memref<4x34xf32, #tpu.memory_space<vmem>>, vector<4x32xf32>
    %cst_206 = arith.constant dense<0.000000e+00> : vector<4x32xf32>
    %218 = tpu.matmul %56, %217, %cst_206 {dimension_numbers = #tpu.dot_dimension_numbers<[1], [0], [0], [1], [0, 0, 1, 1], [], []>} : vector<4x4xf32>, vector<4x32xf32>, vector<4x32xf32> -> vector<4x32xf32>
    %219 = arith.addf %216, %218 : vector<4x32xf32>
    %c0_207 = arith.constant 0 : index
    %c2_208 = arith.constant 2 : index
    %220 = vector.load %arg19[%c0_207, %c2_208] : memref<4x34xf32, #tpu.memory_space<vmem>>, vector<4x32xf32>
    %cst_209 = arith.constant dense<0.000000e+00> : vector<4x32xf32>
    %221 = tpu.matmul %58, %220, %cst_209 {dimension_numbers = #tpu.dot_dimension_numbers<[1], [0], [0], [1], [0, 0, 1, 1], [], []>} : vector<4x4xf32>, vector<4x32xf32>, vector<4x32xf32> -> vector<4x32xf32>
    %222 = arith.addf %219, %221 : vector<4x32xf32>
    %cst_210 = arith.constant 0.000000e+00 : f32
    %223 = vector.broadcast %cst_210 : f32 to vector<4x32xf32>
    %224 = arith.maximumf %222, %223 : vector<4x32xf32>
    %c1_211 = arith.constant 1 : index
    %c0_212 = arith.constant 0 : index
    %c0_213 = arith.constant 0 : index
    %225 = vector.load %arg15[%c1_211, %c0_212, %c0_213] : memref<2x4x32xf32, #tpu.memory_space<vmem>>, vector<1x4x32xf32>
    %226 = vector.shape_cast %225 : vector<1x4x32xf32> to vector<4x32xf32>
    %227 = vector.shape_cast %224 : vector<4x32xf32> to vector<1x4x32xf32>
    tpu.vector_store %arg15[%c1_211, %c0_212, %c0_213], %227 {strides = array<i32>} : memref<2x4x32xf32, #tpu.memory_space<vmem>>, vector<1x4x32xf32>,
    return
  }
}

</mosaic_0001>

<bundles_post_ra>
// kernel: decoder_forward_pallas.1
= control target key start
LH: loop header
LB: loop body
LE: loop exit
PB: predicated region body
PF: predicated region fallthrough
CT: control target
= control target key end

     0   :  { %20 = vsyncpa [#allocation7], 0  ;;  %s4706_s0 = inlined_call_operand.vmem [shape: f32[2,16,8], index: 0, kind: input, shape index: {}]   ;;  %s4707_s1 = inlined_call_operand.vmem [shape: f32[2,8,16], index: 1, kind: input, shape index: {}]   ;;  %s4708_s2 = inlined_call_operand.vmem [shape: f32[2,4,32], index: 2, kind: input, shape index: {}]   ;;  %s4709_s3 = inlined_call_operand.vmem [shape: f32[2,16,16], index: 3, kind: input, shape index: {}]   ;;  %s4710_s4 = inlined_call_operand.vmem [shape: f32[16,1], index: 4, kind: input, shape index: {}]   ;;  %s4711_s5 = inlined_call_operand.vmem [shape: f32[3,8,24], index: 5, kind: input, shape index: {}]   ;;  %s4712_s6 = inlined_call_operand.vmem [shape: f32[8,1], index: 6, kind: input, shape index: {}]   ;;  %s4713_s7 = inlined_call_operand.vmem [shape: f32[3,8,8], index: 7, kind: input, shape index: {}]   ;;  %s4714_s8 = inlined_call_operand.vmem [shape: f32[8,1], index: 8, kind: input, shape index: {}]   ;;  %s4715_s9 = inlined_call_operand.vmem [shape: f32[2,8,8], index: 9, kind: input, shape index: {}]   ;;  %s4716_s10 = inlined_call_operand.vmem [shape: f32[8,1], index: 10, kind: input, shape index: {}]   ;;  %s4717_s11 = inlined_call_operand.hbm [shape: f32[3,4,12], index: 11, kind: input, shape index: {}]   ;;  %s4718_s12 = inlined_call_operand.vmem [shape: f32[4,1], index: 12, kind: input, shape index: {}]   ;;  %s4719_s13 = inlined_call_operand.hbm [shape: f32[3,4,4], index: 13, kind: input, shape index: {}]   ;;  %s4720_s14 = inlined_call_operand.vmem [shape: f32[4,1], index: 14, kind: input, shape index: {}]   ;;  %s4721_s15 = inlined_call_operand.hbm [shape: f32[2,4,32], index: 15, kind: output, shape index: {}]  }
   0x1   :  { %21 = vsyncpa [#allocation10], 0 }
   0x2   :  { %22 = vsyncpa [#allocation8], 0  ;;  %s4084_s18 = smov [#allocation6]   ;;  %s4012_s22 = scalar_lea.hbm %s4717_s11, 192 }
   0x3   :  { %s50_s19 = sshll.u32 %s4084_s18, 4  ;;  %p4013_p0 = scmp.ne.s32.totalorder %s4717_s11, %s4012_s22  ;;  %s51_s19 = int_to_ptr.vmem [resolvable:$true] %s50_s19 }
   0x4   :  { %p4016_p1 = scmp.lt.u32.totalorder %s4012_s22, %s4717_s11 }
   0x6   :  { %p4018_p2 = pnand %p4016_p1, %p4013_p0 }
   0x8   :  { %4021 = shalt.err (!%p4018_p2)
}
   0x9   :  { %s4022_s27 = scalar_lea.vmem %s51_s19, 192  ;;  %p4027_p4 = scmp.lt.s32.totalorder %s51_s19, %s51_s19 }
   0xa   :  { %p4023_p3 = scmp.ne.s32.totalorder %s51_s19, %s4022_s27  ;;  %p4028_p5 = scmp.lt.s32.totalorder %s4022_s27, %s4022_s27 }
   0xc   :  { %p4029_p6 = por %p4028_p5, %p4027_p4 }
   0xe   :  { %p4030_p7 = pnand %p4029_p6, %p4023_p3 }
  0x10   :  { %4033 = shalt.err (!%p4030_p7)
}
  0x11   :  { %s4085_s28 = smov 64   ;;  %s4086_s29 = smov 4  }
  0x12   :  { %56 = dma.hbm_to_vmem [thread:$0]  %s4717_s11, 192, %s51_s19, [#allocation7], %s4085_s28, %s4085_s28, %s4086_s29  }
  0x13   :  { %s4087_s17 = smov [#allocation9]   ;;  %s4034_s22 = scalar_lea.hbm %s4719_s13, 192 }
  0x14   :  { %s64_s18 = sshll.u32 %s4087_s17, 4  ;;  %p4035_p8 = scmp.ne.s32.totalorder %s4719_s13, %s4034_s22  ;;  %s65_s18 = int_to_ptr.vmem [resolvable:$true] %s64_s18 }
  0x15   :  { %p4038_p9 = scmp.lt.u32.totalorder %s4034_s22, %s4719_s13 }
  0x17   :  { %p4040_p10 = pnand %p4038_p9, %p4035_p8 }
  0x19   :  { %4043 = shalt.err (!%p4040_p10)
}
  0x1a   :  { %s4044_s27 = scalar_lea.vmem %s65_s18, 192  ;;  %p4049_p12 = scmp.lt.s32.totalorder %s65_s18, %s65_s18 }
  0x1b   :  { %p4045_p11 = scmp.ne.s32.totalorder %s65_s18, %s4044_s27  ;;  %p4050_p13 = scmp.lt.s32.totalorder %s4044_s27, %s4044_s27 }
  0x1d   :  { %p4051_p0 = por %p4050_p13, %p4049_p12 }
  0x1f   :  { %p4052_p1 = pnand %p4051_p0, %p4045_p11 }
  0x21   :  { %4055 = shalt.err (!%p4052_p1)
}
  0x22   :  { %70 = dma.hbm_to_vmem [thread:$0]  %s4719_s13, 192, %s65_s18, [#allocation10], %s4085_s28, %s4085_s28, %s4086_s29  }
  0x23   :  { %4078 = dma.done.wait [#allocation7], 192  }
  0x24   :  { %4079 = vsyncadd [#allocation7], 4294967104 }
  0x25   :  { %4080 = dma.done.wait [#allocation10], 192  }
  0x26   :  { %4081 = vsyncadd [#allocation10], 4294967104  ;;  %vm182_vm0 = vcmask 130048   ;;  %v180_v0 = vld [vmem:[%s4706_s0] sm:$0xff]  ;;  %v181_v1 = vld [vmem:[%s4706_s0 + $0x8] sm:$0xff]  ;;  %v118_v7 = vlaneseq  ;;  %v4088_v13 = vmov 1.0  }
  0x27   :  { %v4218_v2 = vld [vmem:[%s4709_s3 + $0x10] sm:$0xff]  ;;  %v3841_v3 = vpack.c.bf16 %v181_v1, %v180_v0  ;;  %v4225_v4 = vld [vmem:[%s4709_s3] sm:$0xff]  ;;  %v4232_v5 = vld [vmem:[%s4709_s3 + $0x18] sm:$0xff]  ;;  %v4089_v16 = vmov 0   ;;  %s4090_s30 = smov 1   ;;  %vm345_vm3 = vcmask 64512  }
  0x28   :  { %3600 = vmatprep.mubr.msk.f32.mxu1 %vm182_vm0, %v4218_v2  ;;  %3593 = vmatprep.mubr.msk.f32.mxu0 %vm182_vm0, %v4225_v4  ;;  %v4237_v6 = vld [vmem:[%s4709_s3 + $0x8] sm:$0xff]  ;;  %v4243_v8 = vshrl.u32 %v118_v7, 7  ;;  %v4246_v10 = vand.u32 127, %v118_v7  ;;  %v94_v15 = vld [vmem:[%s4710_s4] sm:$0xff]  ;;  %vm130_vm4 = vcmask 146432   ;;  %vm515_vm5 = vcmask 138248  }
  0x29   :  { %3846 = vmatprep.subr.bf16.mxu1 %v3841_v3  ;;  %3842 = vmatprep.subr.bf16.mxu0 %v3841_v3  ;;  %v510_v17 = vld [vmem:[%s4707_s1] sm:$0xff]  ;;  %v95_v18 = vld [vmem:[%s4710_s4 + $0x8] sm:$0xff]  ;;  %v4091_v24 = vmov 0.0   ;;  %v4092_v27 = vmov 0.0|0.0   ;;  %vm4093_vm6 = vmmov 0   ;;  %s4094_s4 = smov 127  }
  0x2a   :  { %3848 = vmatpush3.bf16.msra.mxu1 %v3841_v3  ;;  %3844 = vmatpush3.bf16.msra.mxu0 %v3841_v3  ;;  %v122_v9 = vmul.u32 2, %v4243_v8  ;;  %131 = vst.msk [vmem:[#allocation2] sm:$0xff] %vm130_vm4, %v4091_v24  ;;  %132 = vst.msk [vmem:[#allocation2 + $0x8] sm:$0xff] %vm130_vm4, %v4091_v24  ;;  %s4095_s20 = smov 126   ;;  %v4312_v39 = vld [vmem:[%s4711_s5] sm:$0xff]  ;;  %vm530_vm7 = vcmask 195584  }
  0x2b   :  { %3970 = vset.pattern.permute.xlu0 %v4089_v16  ;;  %3981 = vset.pattern.permute.xlu1 %v4089_v16  ;;  %133 = vst.msk [vmem:[#allocation2 + $0x10] sm:$0xff] %vm130_vm4, %v4091_v24  ;;  %134 = vst.msk [vmem:[#allocation3] sm:$0xff] %vm130_vm4, %v4091_v24  ;;  %v106_v40 = vld [vmem:[%s4712_s6] sm:$0xff]  ;;  %v4327_v48 = vld [vmem:[%s4711_s5 + $0x8] sm:$0xff]  ;;  %v166_v7 = vadd.s32 8, %v4243_v8  ;;  %vm175_vm12 = vcmask 277504  }
  0x2c   :  { %v126_v11 = vadd.s32 1, %v122_v9  ;;  %vm4260_vm2 = vcmp.eq.s32.totalorder %v4246_v10, %v122_v9  ;;  %98 = vperm.xlu0 %3970, %v94_v15   ;;  %512 = vrot.lane.b32.xlu1 %v510_v17, %s4090_s30  ;;  %v4338_v52 = vld [vmem:[%s4711_s5 + $0x10] sm:$0xff]  ;;  %v4353_v60 = vld [vmem:[%s4713_s7] sm:$0xff]  ;;  %v4371_v63 = vld [vmem:[%s4713_s7 + $0x8] sm:$0xff]  ;;  %vm177_vm13 = vcmask 273408   ;;  %176 = vst.msk [vmem:[#allocation4] sm:$0xff] %vm175_vm12, %v4091_v24 }
  0x2d   :  { %3601 = vmatmul.mubr.msk.f32.vlgmr.msra.gmra.mrb[0].mxu1 %vm182_vm0, %v4232_v5  ;;  %3594 = vmatmul.mubr.msk.f32.vlgmr.msra.gmra.mrb[0].mxu0 %vm182_vm0, %v4237_v6  ;;  %v148_v61 = vld [vmem:[%s4716_s10] sm:$0xff]  ;;  %v4382_v3 = vld [vmem:[%s4713_s7 + $0x10] sm:$0xff]  ;;  %v167_v9 = vmul.u32 2, %v166_v7  ;;  %178 = vst.msk [vmem:[#allocation4 + $0x8] sm:$0xf] %vm177_vm13, %v4091_v24  ;;  %vm1309_vm14 = vcmask 265224  }
  0x2e   :  { %vm4249_vm1 = vcmp.eq.s32.totalorder %v4246_v10, %v126_v11  ;;  %3849 = vmatprep.subr.bf16.mxu1 %v4092_v27  ;;  %3619 = vmatprep.mubr.msk.f32.mxu1 %vm4093_vm6, %v4091_v24  ;;  %v112_v62 = vld [vmem:[%s4714_s8] sm:$0xff]  ;;  %179 = vst.msk [vmem:[#allocation5] sm:$0xf] %vm177_vm13, %v4091_v24  ;;  %vm1315_vm15 = vcmask 269320   ;;  %vm1323_vm4 = vcmask 1043456   ;;  %vm1319_vm13 = vcmask 97280  }
  0x2f   :  { %3603 = vmatprep.subr.msk.mxu0 %vm4249_vm1, %v4088_v13  ;;  %v171_v11 = vadd.s32 1, %v167_v9  ;;  %vm4393_vm8 = vcmp.eq.s32.totalorder %v4246_v10, %v167_v9  ;;  %v4401_v8 = vld [vmem:[%s4715_s9] sm:$0xff]  ;;  %v4535_v12 = vld [vmem:[#allocation9 + $0x8] sm:$0xf] }
  0x30   :  { %3604 = vmatpush3.msk.msra.mxu0 %vm4249_vm1, %v4088_v13  ;;  %103 = vperm.xlu0 %3970, %v95_v18   ;;  %vm3862_vm10 = vmpackc.low %vm4393_vm8, %vm4260_vm2  ;;  %v3462_v14 = vld [vmem:[%s4708_s2 + $0x4] sm:$0xf] }
  0x31   :  { %3608 = vmatprep.subr.msk.mxu0 %vm4260_vm2, %v4088_v13  ;;  %vm172_vm9 = vcmp.eq.s32.totalorder %v4246_v10, %v171_v11 }
  0x32   :  { %vm4414_vm11 = vmpackc.low %vm172_vm9, %vm4249_vm1  ;;  %vm4097_vm9 = vmmov 1  }
  0x33   :  { %vm4459_vm12 = vmpackc.low %vm1323_vm4, %vm4097_vm9  ;;  %vm1568_vm9 = vcmask 31744  }
  0x9e   :  { %v513_v23 = vpop.permute.xlu1 %512 }
  0x9f   :  { %516 = vst.msk [vmem:[#allocation2] sm:$0xff] %vm515_vm5, %v513_v23 }
  0xa6   :  { %v527_v35 = vld [vmem:[#allocation2] sm:$0xff] }
  0xab   :  { %v4290_v25 = vpop.permute.xlu0 %98 }
  0xaf   :  { %v4292_v26 = vpop.permute.xlu0 %103 }
 0x100   :  { %v3602_v19 = vpop.f32.mrb[0].mxu1  ;;  %v3595_v20 = vpop.f32.mrb[0].mxu0 }
 0x101   :  { %v336_v21 = vpop.f32.mrb[1].mxu1  ;;  %v255_v22 = vpop.f32.mrb[1].mxu0 }
 0x102   :  { %3605 = vmatprep.mubr.msk.f32.mxu0 %vm345_vm3, %v336_v21  ;;  %v4406_v21 = vld [vmem:[%s4715_s9 + $0x8] sm:$0xff] }
 0x103   :  { %3606 = vmatmul.mubr.msk.f32.vlgmr.msra.gmra.mrb[2].mxu0 %vm345_vm3, %v3602_v19 }
 0x104   :  { %3610 = vmatprep.mubr.msk.f32.mxu0 %vm345_vm3, %v255_v22  ;;  %3609 = vmatpush3.msk.msra.mxu0 %vm4260_vm2, %v4088_v13  ;;  %v4096_v22 = vmov 1.0|1.0  }
 0x105   :  { %3640 = vmatprep.subr.mxu0 %v4091_v24 }
 0x10b   :  { %3611 = vmatmul.mubr.msk.f32.vlgmr.msra.gmra.mrb[2].mxu0 %vm345_vm3, %v3595_v20 }
 0x10c   :  { %3642 = vmatprep.mubr.msk.f32.mxu0 %vm4093_vm6, %v4091_v24 }
 0x1de   :  { %v3612_v28 = vpop.f32.mrb[2].mxu0 }
 0x1df   :  { %v509_v29 = vadd.f32 %v3612_v28, %v4292_v26  ;;  %v499_v30 = vpop.f32.mrb[3].mxu0 }
 0x1e0   :  { %v508_v31 = vadd.f32 %v499_v30, %v4290_v25 }
 0x1e1   :  { %521 = vrot.lane.b32.xlu0 %v509_v29, %s4090_s30 }
 0x1e2   :  { %519 = vrot.lane.b32.xlu1 %v508_v31, %s4090_s30  ;;  %v1304_v31 = vld [vmem:[%s4708_s2] sm:$0xf] }
 0x253   :  { %v522_v32 = vpop.permute.xlu0 %521 }
 0x254   :  { %526 = vst.msk [vmem:[#allocation2 + $0x10] sm:$0xff] %vm515_vm5, %v522_v32  ;;  %v520_v33 = vpop.permute.xlu1 %519 }
 0x255   :  { %525 = vst.msk [vmem:[#allocation2 + $0x8] sm:$0xff] %vm515_vm5, %v520_v33 }
 0x25b   :  { %v529_v34 = vld [vmem:[#allocation2 + $0x10] sm:$0xff] }
 0x25c   :  { %612 = vrot.lane.b32.xlu0 %v529_v34, %s4094_s4  ;;  %v528_v36 = vld [vmem:[#allocation2 + $0x8] sm:$0xff] }
 0x25d   :  { %v3971_v37 = vpack.i.bf16 %v528_v36, %v527_v35  ;;  %v3850_v38 = vpack.c.bf16 %v528_v36, %v527_v35 }
 0x25f   :  { %3972 = vrot.lane.b32.xlu1 %v3971_v37, %s4094_s4  ;;  %3851 = vmatpush3.bf16.msra.mxu1 %v3850_v38 }
 0x260   :  { %695 = vrot.lane.b32.xlu0 %v529_v34, %s4095_s20  ;;  %3617 = vmatprep.subr.mxu1 %v4091_v24 }
 0x263   :  { %3977 = vrot.lane.b32.xlu1 %v3971_v37, %s4095_s20  ;;  %3618 = vmatpush3.msra.mxu1 %v529_v34 }
 0x264   :  { %3620 = vmatmul.mubr.msk.f32.vlgmr.msra.gmra.mrb[2].mxu1 %vm530_vm7, %v4312_v39  ;;  %3852 = vmatprep.subr.bf16.mxu1 %v4092_v27 }
 0x265   :  { %3628 = vmatprep.mubr.msk.f32.mxu1 %vm4093_vm6, %v4091_v24 }
 0x267   :  { %109 = vperm.xlu1 %3981, %v106_v40  }
 0x2ce   :  { %v613_v49 = vpop.permute.xlu0 %612 }
 0x2d1   :  { %v3973_v41 = vpop.permute.xlu1 %3972 }
 0x2d2   :  { %v3975_v42 = vunpack.i.h.bf16 %v3973_v41  ;;  %v3974_v43 = vunpack.i.l.bf16 %v3973_v41  ;;  %v696_v51 = vpop.permute.xlu0 %695 }
 0x2d4   :  { %v3853_v44 = vpack.c.bf16 %v3975_v42, %v3974_v43 }
 0x2d5   :  { %v3978_v45 = vpop.permute.xlu1 %3977 }
 0x2d6   :  { %v3980_v46 = vunpack.i.h.bf16 %v3978_v45  ;;  %v3979_v47 = vunpack.i.l.bf16 %v3978_v45  ;;  %3854 = vmatpush3.bf16.msra.mxu1 %v3853_v44 }
 0x2d7   :  { %3626 = vmatprep.subr.mxu1 %v4091_v24 }
 0x2d8   :  { %v3856_v50 = vpack.c.bf16 %v3980_v46, %v3979_v47  ;;  %v154_v47 = vld [vmem:[%s4718_s12] sm:$0xf] }
 0x2d9   :  { %v160_v46 = vld [vmem:[%s4720_s14] sm:$0xf]  ;;  %s4098_s14 = smov [#allocation11]  }
 0x2da   :  { %3627 = vmatpush3.msra.mxu1 %v613_v49  ;;  %v4470_v49 = vld [vmem:[#allocation6] sm:$0xf] }
 0x2db   :  { %3629 = vmatmul.mubr.msk.f32.vlgmr.msra.gmra.mrb[2].mxu1 %vm530_vm7, %v4327_v48  ;;  %3855 = vmatprep.subr.bf16.mxu1 %v4092_v27 }
 0x2dc   :  { %3857 = vmatpush3.bf16.msra.mxu1 %v3856_v50  ;;  %3637 = vmatprep.mubr.msk.f32.mxu1 %vm4093_vm6, %v4091_v24 }
 0x2dd   :  { %3635 = vmatprep.subr.mxu1 %v4091_v24 }
 0x2e0   :  { %3636 = vmatpush3.msra.mxu1 %v696_v51 }
 0x2e1   :  { %3655 = vmatprep.subr.mxu1 %v4091_v24 }
 0x2e3   :  { %3638 = vmatmul.mubr.msk.f32.vlgmr.msra.gmra.mrb[2].mxu1 %vm530_vm7, %v4338_v52 }
 0x2e4   :  { %3657 = vmatprep.mubr.msk.f32.mxu1 %vm4093_vm6, %v4091_v24 }
 0x2e6   :  { %v4345_v53 = vpop.permute.xlu1 %109 }
 0x3b6   :  { %v769_v54 = vpop.f32.mrb[2].mxu1 }
 0x3b7   :  { %v3911_v55 = vadd.f32 %v769_v54, %v4345_v53  ;;  %v3639_v56 = vpop.f32.mrb[3].mxu1 }
 0x3b9   :  { %v774_v57 = vmax.f32 %v3911_v55, 0.0 }
 0x3bb   :  { %776 = vrot.lane.b32.xlu0 %v774_v57, %s4090_s30 }
 0x42d   :  { %v777_v58 = vpop.permute.xlu0 %776 }
 0x42e   :  { %779 = vst.msk [vmem:[#allocation3] sm:$0xff] %vm515_vm5, %v777_v58 }
 0x435   :  { %v780_v59 = vld [vmem:[#allocation3] sm:$0xff] }
 0x436   :  { %933 = vrot.lane.b32.xlu0 %v780_v59, %s4095_s20  ;;  %856 = vrot.lane.b32.xlu1 %v780_v59, %s4094_s4 }
 0x437   :  { %3641 = vmatpush3.msra.mxu0 %v780_v59  ;;  %v4479_v59 = vld [vmem:[#allocation6 + $0x4] sm:$0xf] }
 0x438   :  { %3643 = vmatmul.mubr.msk.f32.vlgmr.msra.gmra.mrb[4].mxu0 %vm345_vm3, %v4353_v60  ;;  %3645 = vmatprep.subr.mxu0 %v4091_v24 }
 0x439   :  { %3647 = vmatprep.mubr.msk.f32.mxu0 %vm4093_vm6, %v4091_v24 }
 0x43a   :  { %151 = vperm.xlu0 %3970, %v148_v61   ;;  %115 = vperm.xlu1 %3981, %v112_v62   ;;  %v4488_v62 = vld [vmem:[#allocation6 + $0x8] sm:$0xf] }
 0x43e   :  { %1306 = vrot.lane.b32.xlu1 %v1304_v31, %s4090_s30 }
 0x4a8   :  { %v857_v0 = vpop.permute.xlu1 %856  ;;  %v934_v1 = vpop.permute.xlu0 %933 }
 0x4a9   :  { %3646 = vmatpush3.msra.mxu0 %v857_v0 }
 0x4aa   :  { %3648 = vmatmul.mubr.msk.f32.vlgmr.msra.gmra.mrb[4].mxu0 %vm345_vm3, %v4371_v63  ;;  %3650 = vmatprep.subr.mxu0 %v4091_v24 }
 0x4ab   :  { %3651 = vmatpush3.msra.mxu0 %v934_v1  ;;  %3652 = vmatprep.mubr.msk.f32.mxu0 %vm4093_vm6, %v4091_v24 }
 0x4ac   :  { %3660 = vmatprep.subr.mxu0 %v4091_v24 }
 0x4b2   :  { %3653 = vmatmul.mubr.msk.f32.vlgmr.msra.gmra.mrb[4].mxu0 %vm345_vm3, %v4382_v3 }
 0x4b3   :  { %3662 = vmatprep.mubr.msk.f32.mxu0 %vm4093_vm6, %v4091_v24 }
 0x4b9   :  { %v4389_v15 = vpop.permute.xlu1 %115  ;;  %v4453_v38 = vpop.permute.xlu0 %151 }
 0x4bd   :  { %v1307_v32 = vpop.permute.xlu1 %1306 }
 0x4be   :  { %1310 = vst.msk [vmem:[#allocation4] sm:$0xf] %vm1309_vm14, %v1307_v32  ;;  %v3447_v32 = vld [vmem:[%s4707_s1 + $0x8] sm:$0xff] }
 0x585   :  { %v1005_v16 = vpop.f32.mrb[4].mxu0 }
 0x586   :  { %v3912_v17 = vadd.f32 %v1005_v16, %v4389_v15  ;;  %v3654_v18 = vpop.f32.mrb[5].mxu0 }
 0x588   :  { %v1010_v20 = vmax.f32 %v3912_v17, 0.0  ;;  %v3435_v17 = vld [vmem:[%s4706_s0 + $0x10] sm:$0xff] }
 0x58a   :  { %3656 = vmatpush3.msra.mxu1 %v1010_v20  ;;  %3661 = vmatpush3.msra.mxu0 %v1010_v20 }
 0x58b   :  { %3658 = vmatmul.mubr.msk.f32.vlgmr.msra.gmra.mrb[4].mxu1 %vm345_vm3, %v4401_v8  ;;  %3663 = vmatmul.mubr.msk.f32.vlgmr.msra.gmra.mrb[6].mxu0 %vm345_vm3, %v4406_v21 }
 0x58c   :  { %3858 = vmatprep.subr.bf16.mxu1 %v4092_v27  ;;  %3861 = vmatprep.subr.bf16.mxu0 %v4092_v27 }
 0x58d   :  { %3860 = vmatpush3.bf16.msk.msra.mxu1 %vm4414_vm11, %v4096_v22  ;;  %3863 = vmatpush3.bf16.msk.msra.mxu0 %vm3862_vm10, %v4096_v22 }
 0x58e   :  { %3669 = vmatprep.mubr.msk.f32.mxu1 %vm4093_vm6, %v4091_v24  ;;  %3676 = vmatprep.mubr.msk.f32.mxu0 %vm4093_vm6, %v4091_v24 }
 0x58f   :  { %3864 = vmatprep.subr.bf16.mxu1 %v4092_v27  ;;  %3700 = vmatprep.subr.mxu0 %v4091_v24 }
 0x65e   :  { %v1080_v23 = vpop.f32.mrb[4].mxu1  ;;  %v1153_v28 = vpop.f32.mrb[6].mxu0 }
 0x65f   :  { %v3659_v29 = vpop.f32.mrb[5].mxu1  ;;  %v3664_v30 = vpop.f32.mrb[7].mxu0  ;;  %3670 = vmatmul.mubr.msk.f32.vlgmr.msra.gmra.mrb[6].mxu1 %vm182_vm0, %v1153_v28  ;;  %3677 = vmatmul.mubr.msk.f32.vlgmr.msra.gmra.mrb[8].mxu0 %vm182_vm0, %v1080_v23  ;;  %v4505_v23 = vld [vmem:[#allocation9] sm:$0xf]  ;;  %v4526_v28 = vld [vmem:[#allocation9 + $0x4] sm:$0xf] }
 0x660   :  { %3683 = vmatprep.mubr.msk.f32.mxu1 %vm4093_vm6, %v4091_v24  ;;  %3702 = vmatprep.mubr.msk.f32.mxu0 %vm4093_vm6, %v4091_v24 }
 0x732   :  { %v1226_v33 = vpop.f32.mrb[6].mxu1  ;;  %v1299_v34 = vpop.f32.mrb[8].mxu0 }
 0x733   :  { %v1300_v35 = vadd.f32 %v1299_v34, %v1226_v33  ;;  %v3671_v36 = vpop.f32.mrb[7].mxu1  ;;  %v3678_v37 = vpop.f32.mrb[9].mxu0 }
 0x735   :  { %v1303_v40 = vadd.f32 %v1300_v35, %v4453_v38 }
 0x737   :  { %1312 = vrot.lane.b32.xlu0 %v1303_v40, %s4090_s30 }
 0x7a9   :  { %v1313_v41 = vpop.permute.xlu0 %1312 }
 0x7aa   :  { %1316 = vst.msk [vmem:[#allocation4 + $0x4] sm:$0xff] %vm1315_vm15, %v1313_v41 }
 0x7b1   :  { %v1317_v42 = vld [vmem:[#allocation4] sm:$0xff]  ;;  %v1318_v43 = vld [vmem:[#allocation4 + $0x8] sm:$0xf] }
 0x7b2   :  { %v3987_v44 = vpack.i.bf16 %v1318_v43, %v1317_v42  ;;  %v3865_v45 = vpack.c.bf16 %v1318_v43, %v1317_v42 }
 0x7b4   :  { %3988 = vrot.lane.b32.xlu0 %v3987_v44, %s4095_s20  ;;  %3983 = vrot.lane.b32.xlu1 %v3987_v44, %s4094_s4 }
 0x7b5   :  { %3867 = vmatpush3.bf16.msk.msra.mxu1 %vm4459_vm12, %v3865_v45 }
 0x7b6   :  { %3868 = vmatprep.subr.bf16.mxu1 %v4092_v27 }
 0x7b8   :  { %157 = vperm.xlu1 %3981, %v154_v47   ;;  %3684 = vmatmul.mubr.msk.f32.vlgmr.msra.gmra.mrb[8].mxu1 %vm1319_vm13, %v4470_v49 }
 0x7b9   :  { %3690 = vmatprep.mubr.msk.f32.mxu1 %vm4093_vm6, %v4091_v24 }
 0x826   :  { %v3989_v50 = vpop.permute.xlu0 %3988  ;;  %v3984_v51 = vpop.permute.xlu1 %3983 }
 0x827   :  { %v3986_v54 = vunpack.i.h.bf16 %v3984_v51  ;;  %v3985_v55 = vunpack.i.l.bf16 %v3984_v51  ;;  %v3991_v56 = vunpack.i.h.bf16 %v3989_v50  ;;  %v3990_v57 = vunpack.i.l.bf16 %v3989_v50 }
 0x829   :  { %v3869_v58 = vpack.c.bf16 %v3986_v54, %v3985_v55  ;;  %v3873_v61 = vpack.c.bf16 %v3991_v56, %v3990_v57 }
 0x82b   :  { %3871 = vmatpush3.bf16.msk.msra.mxu1 %vm4459_vm12, %v3869_v58 }
 0x82c   :  { %3872 = vmatprep.subr.bf16.mxu1 %v4092_v27 }
 0x82e   :  { %3691 = vmatmul.mubr.msk.f32.vlgmr.msra.gmra.mrb[8].mxu1 %vm1319_vm13, %v4479_v59 }
 0x82f   :  { %3875 = vmatpush3.bf16.msk.msra.mxu1 %vm4459_vm12, %v3873_v61  ;;  %3697 = vmatprep.mubr.msk.f32.mxu1 %vm4093_vm6, %v4091_v24 }
 0x836   :  { %3698 = vmatmul.mubr.msk.f32.vlgmr.msra.gmra.mrb[8].mxu1 %vm1319_vm13, %v4488_v62 }
 0x837   :  { %3719 = vmatprep.mubr.msk.f32.mxu1 %vm182_vm0, %v4225_v4  ;;  %v4494_v0 = vpop.permute.xlu1 %157  ;;  %v3436_v4 = vld [vmem:[%s4706_s0 + $0x18] sm:$0xff] }
 0x838   :  { %v3876_v18 = vpack.c.bf16 %v3436_v4, %v3435_v17 }
 0x83a   :  { %3877 = vmatprep.subr.bf16.mxu1 %v3876_v18 }
 0x83b   :  { %3879 = vmatpush3.bf16.msra.mxu1 %v3876_v18 }
 0x83c   :  { %3729 = vmatprep.subr.msk.mxu1 %vm4249_vm1, %v4088_v13 }
 0x83e   :  { %3720 = vmatmul.mubr.msk.f32.vlgmr.msra.gmra.mrb[10].mxu1 %vm182_vm0, %v4237_v6 }
 0x83f   :  { %3730 = vmatpush3.msk.msra.mxu1 %vm4249_vm1, %v4088_v13 }
 0x840   :  { %3734 = vmatprep.subr.msk.mxu1 %vm4260_vm2, %v4088_v13 }
 0x909   :  { %v1556_v1 = vpop.f32.mrb[8].mxu1 }
 0x90a   :  { %v3913_v7 = vadd.f32 %v1556_v1, %v4494_v0  ;;  %v3699_v9 = vpop.f32.mrb[9].mxu1 }
 0x90c   :  { %v1561_v11 = vmax.f32 %v3913_v7, 0.0 }
 0x90e   :  { %1563 = vrot.lane.b32.xlu0 %v1561_v11, %s4090_s30 }
 0x911   :  { %v3721_v30 = vpop.f32.mrb[10].mxu1 }
 0x912   :  { %v1874_v31 = vpop.f32.mrb[11].mxu1 }
 0x980   :  { %v1564_v16 = vpop.permute.xlu0 %1563 }
 0x981   :  { %1566 = vst.msk [vmem:[#allocation5] sm:$0xf] %vm1309_vm14, %v1564_v16 }
 0x988   :  { %v1567_v20 = vld [vmem:[#allocation5] sm:$0xf] }
 0x989   :  { %1724 = vrot.lane.b32.xlu0 %v1567_v20, %s4095_s20  ;;  %1646 = vrot.lane.b32.xlu1 %v1567_v20, %s4094_s4 }
 0x98a   :  { %3701 = vmatpush3.msk.msra.mxu0 %vm1323_vm4, %v1567_v20 }
 0x98b   :  { %3703 = vmatmul.mubr.msk.f32.vlgmr.msra.gmra.mrb[10].mxu0 %vm1568_vm9, %v4505_v23  ;;  %3705 = vmatprep.subr.mxu0 %v4091_v24 }
 0x98c   :  { %3707 = vmatprep.mubr.msk.f32.mxu0 %vm4093_vm6, %v4091_v24 }
 0x98d   :  { %2125 = vrot.lane.b32.xlu1 %v3447_v32, %s4090_s30 }
 0x9fb   :  { %v1647_v29 = vpop.permute.xlu1 %1646  ;;  %v1725_v6 = vpop.permute.xlu0 %1724 }
 0x9fc   :  { %3706 = vmatpush3.msk.msra.mxu0 %vm1323_vm4, %v1647_v29 }
 0x9fd   :  { %3708 = vmatmul.mubr.msk.f32.vlgmr.msra.gmra.mrb[10].mxu0 %vm1568_vm9, %v4526_v28  ;;  %3710 = vmatprep.subr.mxu0 %v4091_v24 }
 0x9fe   :  { %3711 = vmatpush3.msk.msra.mxu0 %vm1323_vm4, %v1725_v6  ;;  %3712 = vmatprep.mubr.msk.f32.mxu0 %vm4093_vm6, %v4091_v24 }
 0x9ff   :  { %3881 = vmatprep.subr.bf16.mxu0 %v3876_v18 }
 0xa05   :  { %3713 = vmatmul.mubr.msk.f32.vlgmr.msra.gmra.mrb[10].mxu0 %vm1568_vm9, %v4535_v12 }
 0xa06   :  { %3883 = vmatpush3.bf16.msra.mxu0 %v3876_v18  ;;  %3726 = vmatprep.mubr.msk.f32.mxu0 %vm182_vm0, %v4218_v2 }
 0xa07   :  { %3884 = vmatprep.subr.bf16.mxu0 %v4092_v27 }
 0xa09   :  { %3727 = vmatmul.mubr.msk.f32.vlgmr.msra.gmra.mrb[12].mxu0 %vm182_vm0, %v4232_v5  ;;  %v2126_v5 = vpop.permute.xlu1 %2125 }
 0xa0a   :  { %3745 = vmatprep.mubr.msk.f32.mxu0 %vm4093_vm6, %v4091_v24  ;;  %2128 = vst.msk [vmem:[#allocation2] sm:$0xff] %vm515_vm5, %v2126_v5 }
 0xa11   :  { %v2139_v43 = vld [vmem:[#allocation2] sm:$0xff] }
 0xad8   :  { %v4550_v33 = vpop.f32.mrb[10].mxu0 }
 0xad9   :  { %v3714_v34 = vpop.f32.mrb[11].mxu0 }
 0xadc   :  { %v3728_v2 = vpop.f32.mrb[12].mxu0 }
 0xadd   :  { %v1949_v35 = vpop.f32.mrb[13].mxu0 }
 0xade   :  { %3731 = vmatprep.mubr.msk.f32.mxu1 %vm345_vm3, %v1949_v35 }
 0xadf   :  { %3732 = vmatmul.mubr.msk.f32.vlgmr.msra.gmra.mrb[12].mxu1 %vm345_vm3, %v3728_v2 }
 0xae0   :  { %3736 = vmatprep.mubr.msk.f32.mxu1 %vm345_vm3, %v1874_v31  ;;  %3735 = vmatpush3.msk.msra.mxu1 %vm4260_vm2, %v4088_v13 }
 0xae1   :  { %3766 = vmatprep.subr.mxu1 %v4091_v24 }
 0xae7   :  { %3737 = vmatmul.mubr.msk.f32.vlgmr.msra.gmra.mrb[12].mxu1 %vm345_vm3, %v3721_v30 }
 0xae8   :  { %3768 = vmatprep.mubr.msk.f32.mxu1 %vm4093_vm6, %v4091_v24 }
 0xbba   :  { %v3738_v36 = vpop.f32.mrb[12].mxu1 }
 0xbbb   :  { %v2121_v37 = vadd.f32 %v3738_v36, %v4292_v26  ;;  %v2111_v40 = vpop.f32.mrb[13].mxu1 }
 0xbbc   :  { %v2120_v41 = vadd.f32 %v2111_v40, %v4290_v25 }
 0xbbd   :  { %2133 = vrot.lane.b32.xlu1 %v2121_v37, %s4090_s30 }
 0xbbe   :  { %2131 = vrot.lane.b32.xlu0 %v2120_v41, %s4090_s30 }
 0xc2f   :  { %v2134_v13 = vpop.permute.xlu1 %2133 }
 0xc30   :  { %2138 = vst.msk [vmem:[#allocation2 + $0x10] sm:$0xff] %vm515_vm5, %v2134_v13  ;;  %v2132_v42 = vpop.permute.xlu0 %2131 }
 0xc31   :  { %2137 = vst.msk [vmem:[#allocation2 + $0x8] sm:$0xff] %vm515_vm5, %v2132_v42 }
 0xc37   :  { %v2141_v44 = vld [vmem:[#allocation2 + $0x10] sm:$0xff] }
 0xc38   :  { %2220 = vrot.lane.b32.xlu1 %v2141_v44, %s4094_s4  ;;  %v2140_v45 = vld [vmem:[#allocation2 + $0x8] sm:$0xff] }
 0xc39   :  { %v3992_v47 = vpack.i.bf16 %v2140_v45, %v2139_v43  ;;  %v3885_v26 = vpack.c.bf16 %v2140_v45, %v2139_v43 }
 0xc3b   :  { %3993 = vrot.lane.b32.xlu0 %v3992_v47, %s4094_s4  ;;  %3886 = vmatpush3.bf16.msra.mxu0 %v3885_v26 }
 0xc3c   :  { %2300 = vrot.lane.b32.xlu1 %v2141_v44, %s4095_s20  ;;  %3743 = vmatprep.subr.mxu0 %v4091_v24 }
 0xc3f   :  { %3998 = vrot.lane.b32.xlu0 %v3992_v47, %s4095_s20  ;;  %3744 = vmatpush3.msra.mxu0 %v2141_v44 }
 0xc40   :  { %3746 = vmatmul.mubr.msk.f32.vlgmr.msra.gmra.mrb[14].mxu0 %vm530_vm7, %v4312_v39  ;;  %3887 = vmatprep.subr.bf16.mxu0 %v4092_v27 }
 0xc41   :  { %3754 = vmatprep.mubr.msk.f32.mxu0 %vm4093_vm6, %v4091_v24 }
 0xcaa   :  { %v2221_v58 = vpop.permute.xlu1 %2220 }
 0xcad   :  { %v3994_v25 = vpop.permute.xlu0 %3993 }
 0xcae   :  { %v3996_v50 = vunpack.i.h.bf16 %v3994_v25  ;;  %v3995_v51 = vunpack.i.l.bf16 %v3994_v25  ;;  %v2301_v39 = vpop.permute.xlu1 %2300 }
 0xcb0   :  { %v3888_v54 = vpack.c.bf16 %v3996_v50, %v3995_v51 }
 0xcb1   :  { %v3999_v55 = vpop.permute.xlu0 %3998 }
 0xcb2   :  { %v4001_v56 = vunpack.i.h.bf16 %v3999_v55  ;;  %v4000_v57 = vunpack.i.l.bf16 %v3999_v55  ;;  %3889 = vmatpush3.bf16.msra.mxu0 %v3888_v54 }
 0xcb3   :  { %3752 = vmatprep.subr.mxu0 %v4091_v24 }
 0xcb4   :  { %v3891_v61 = vpack.c.bf16 %v4001_v56, %v4000_v57 }
 0xcb6   :  { %3753 = vmatpush3.msra.mxu0 %v2221_v58 }
 0xcb7   :  { %3755 = vmatmul.mubr.msk.f32.vlgmr.msra.gmra.mrb[14].mxu0 %vm530_vm7, %v4327_v48  ;;  %3890 = vmatprep.subr.bf16.mxu0 %v4092_v27 }
 0xcb8   :  { %3892 = vmatpush3.bf16.msra.mxu0 %v3891_v61  ;;  %3763 = vmatprep.mubr.msk.f32.mxu0 %vm4093_vm6, %v4091_v24 }
 0xcb9   :  { %3761 = vmatprep.subr.mxu0 %v4091_v24 }
 0xcbc   :  { %3762 = vmatpush3.msra.mxu0 %v2301_v39 }
 0xcbd   :  { %3781 = vmatprep.subr.mxu0 %v4091_v24 }
 0xcbf   :  { %3764 = vmatmul.mubr.msk.f32.vlgmr.msra.gmra.mrb[14].mxu0 %vm530_vm7, %v4338_v52 }
 0xcc0   :  { %3783 = vmatprep.mubr.msk.f32.mxu0 %vm4093_vm6, %v4091_v24 }
 0xd92   :  { %v2371_v1 = vpop.f32.mrb[14].mxu0 }
 0xd93   :  { %v3915_v48 = vadd.f32 %v2371_v1, %v4345_v53  ;;  %v3765_v7 = vpop.f32.mrb[15].mxu0 }
 0xd95   :  { %v2376_v9 = vmax.f32 %v3915_v48, 0.0 }
 0xd97   :  { %2378 = vrot.lane.b32.xlu0 %v2376_v9, %s4090_s30 }
 0xe09   :  { %v2379_v11 = vpop.permute.xlu0 %2378 }
 0xe0a   :  { %2381 = vst.msk [vmem:[#allocation3] sm:$0xff] %vm515_vm5, %v2379_v11 }
 0xe11   :  { %v2382_v16 = vld [vmem:[#allocation3] sm:$0xff] }
 0xe12   :  { %2529 = vrot.lane.b32.xlu0 %v2382_v16, %s4095_s20  ;;  %2455 = vrot.lane.b32.xlu1 %v2382_v16, %s4094_s4 }
 0xe13   :  { %3767 = vmatpush3.msra.mxu1 %v2382_v16 }
 0xe14   :  { %3769 = vmatmul.mubr.msk.f32.vlgmr.msra.gmra.mrb[14].mxu1 %vm345_vm3, %v4353_v60  ;;  %3771 = vmatprep.subr.mxu1 %v4091_v24 }
 0xe15   :  { %3773 = vmatprep.mubr.msk.f32.mxu1 %vm4093_vm6, %v4091_v24 }
 0xe16   :  { %2894 = vrot.lane.b32.xlu1 %v3462_v14, %s4090_s30 }
 0xe84   :  { %v2456_v52 = vpop.permute.xlu1 %2455  ;;  %v2530_v53 = vpop.permute.xlu0 %2529 }
 0xe85   :  { %3772 = vmatpush3.msra.mxu1 %v2456_v52 }
 0xe86   :  { %3774 = vmatmul.mubr.msk.f32.vlgmr.msra.gmra.mrb[14].mxu1 %vm345_vm3, %v4371_v63  ;;  %3776 = vmatprep.subr.mxu1 %v4091_v24 }
 0xe87   :  { %3777 = vmatpush3.msra.mxu1 %v2530_v53  ;;  %3778 = vmatprep.mubr.msk.f32.mxu1 %vm4093_vm6, %v4091_v24 }
 0xe88   :  { %3786 = vmatprep.subr.mxu1 %v4091_v24  ;;  %v2895_v19 = vpop.permute.xlu1 %2894 }
 0xe89   :  { %2897 = vst.msk [vmem:[#allocation4] sm:$0xf] %vm1309_vm14, %v2895_v19 }
 0xe8e   :  { %3779 = vmatmul.mubr.msk.f32.vlgmr.msra.gmra.mrb[14].mxu1 %vm345_vm3, %v4382_v3 }
 0xe8f   :  { %3788 = vmatprep.mubr.msk.f32.mxu1 %vm4093_vm6, %v4091_v24 }
 0xf61   :  { %v2598_v60 = vpop.f32.mrb[14].mxu1 }
 0xf62   :  { %v3916_v17 = vadd.f32 %v2598_v60, %v4389_v15  ;;  %v3780_v4 = vpop.f32.mrb[15].mxu1 }
 0xf64   :  { %v2603_v18 = vmax.f32 %v3916_v17, 0.0 }
 0xf66   :  { %3782 = vmatpush3.msra.mxu0 %v2603_v18  ;;  %3787 = vmatpush3.msra.mxu1 %v2603_v18 }
 0xf67   :  { %3784 = vmatmul.mubr.msk.f32.vlgmr.msra.gmra.mrb[16].mxu0 %vm345_vm3, %v4401_v8  ;;  %3789 = vmatmul.mubr.msk.f32.vlgmr.msra.gmra.mrb[16].mxu1 %vm345_vm3, %v4406_v21 }
 0xf68   :  { %3893 = vmatprep.subr.bf16.mxu0 %v4092_v27  ;;  %3896 = vmatprep.subr.bf16.mxu1 %v4092_v27 }
 0xf69   :  { %3895 = vmatpush3.bf16.msk.msra.mxu0 %vm4414_vm11, %v4096_v22  ;;  %3898 = vmatpush3.bf16.msk.msra.mxu1 %vm3862_vm10, %v4096_v22 }
 0xf6a   :  { %3795 = vmatprep.mubr.msk.f32.mxu0 %vm4093_vm6, %v4091_v24  ;;  %3802 = vmatprep.mubr.msk.f32.mxu1 %vm4093_vm6, %v4091_v24 }
 0xf6b   :  { %3899 = vmatprep.subr.bf16.mxu0 %v4092_v27  ;;  %3826 = vmatprep.subr.mxu1 %v4091_v24 }
0x103a   :  { %v2670_v63 = vpop.f32.mrb[16].mxu0  ;;  %v2740_v3 = vpop.f32.mrb[16].mxu1 }
0x103b   :  { %v3785_v15 = vpop.f32.mrb[17].mxu0  ;;  %v3790_v8 = vpop.f32.mrb[17].mxu1  ;;  %3796 = vmatmul.mubr.msk.f32.vlgmr.msra.gmra.mrb[18].mxu0 %vm182_vm0, %v2740_v3  ;;  %3803 = vmatmul.mubr.msk.f32.vlgmr.msra.gmra.mrb[18].mxu1 %vm182_vm0, %v2670_v63  ;;  %vm1803_vm0 = vcmask 257024  }
0x103c   :  { %3809 = vmatprep.mubr.msk.f32.mxu0 %vm4093_vm6, %v4091_v24  ;;  %3828 = vmatprep.mubr.msk.f32.mxu1 %vm4093_vm6, %v4091_v24 }
0x110e   :  { %v2813_v21 = vpop.f32.mrb[18].mxu0  ;;  %v2886_v10 = vpop.f32.mrb[18].mxu1 }
0x110f   :  { %v2887_v22 = vadd.f32 %v2886_v10, %v2813_v21  ;;  %v3797_v20 = vpop.f32.mrb[19].mxu0  ;;  %v3804_v29 = vpop.f32.mrb[19].mxu1 }
0x1111   :  { %v2890_v6 = vadd.f32 %v2887_v22, %v4453_v38 }
0x1113   :  { %2899 = vrot.lane.b32.xlu0 %v2890_v6, %s4090_s30 }
0x1185   :  { %v2900_v30 = vpop.permute.xlu0 %2899 }
0x1186   :  { %2902 = vst.msk [vmem:[#allocation4 + $0x4] sm:$0xff] %vm1315_vm15, %v2900_v30 }
0x118d   :  { %v2903_v31 = vld [vmem:[#allocation4] sm:$0xff]  ;;  %v2904_v32 = vld [vmem:[#allocation4 + $0x8] sm:$0xf] }
0x118e   :  { %v4007_v34 = vpack.i.bf16 %v2904_v32, %v2903_v31  ;;  %v3900_v2 = vpack.c.bf16 %v2904_v32, %v2903_v31 }
0x1190   :  { %4008 = vrot.lane.b32.xlu0 %v4007_v34, %s4095_s20  ;;  %4003 = vrot.lane.b32.xlu1 %v4007_v34, %s4094_s4 }
0x1191   :  { %3902 = vmatpush3.bf16.msk.msra.mxu0 %vm4459_vm12, %v3900_v2 }
0x1192   :  { %3903 = vmatprep.subr.bf16.mxu0 %v4092_v27 }
0x1194   :  { %3810 = vmatmul.mubr.msk.f32.vlgmr.msra.gmra.mrb[20].mxu0 %vm1319_vm13, %v4470_v49 }
0x1195   :  { %3816 = vmatprep.mubr.msk.f32.mxu0 %vm4093_vm6, %v4091_v24 }
0x1202   :  { %v4009_v38 = vpop.permute.xlu0 %4008  ;;  %v4004_v35 = vpop.permute.xlu1 %4003 }
0x1203   :  { %v4006_v5 = vunpack.i.h.bf16 %v4004_v35  ;;  %v4005_v36 = vunpack.i.l.bf16 %v4004_v35  ;;  %v4011_v37 = vunpack.i.h.bf16 %v4009_v38  ;;  %v4010_v40 = vunpack.i.l.bf16 %v4009_v38 }
0x1205   :  { %v3904_v41 = vpack.c.bf16 %v4006_v5, %v4005_v36  ;;  %v3908_v13 = vpack.c.bf16 %v4011_v37, %v4010_v40 }
0x1207   :  { %3906 = vmatpush3.bf16.msk.msra.mxu0 %vm4459_vm12, %v3904_v41 }
0x1208   :  { %3907 = vmatprep.subr.bf16.mxu0 %v4092_v27 }
0x120a   :  { %3817 = vmatmul.mubr.msk.f32.vlgmr.msra.gmra.mrb[20].mxu0 %vm1319_vm13, %v4479_v59 }
0x120b   :  { %3910 = vmatpush3.bf16.msk.msra.mxu0 %vm4459_vm12, %v3908_v13  ;;  %3823 = vmatprep.mubr.msk.f32.mxu0 %vm4093_vm6, %v4091_v24 }
0x1212   :  { %3824 = vmatmul.mubr.msk.f32.vlgmr.msra.gmra.mrb[20].mxu0 %vm1319_vm13, %v4488_v62 }
0x12e5   :  { %v3131_v49 = vpop.f32.mrb[20].mxu0 }
0x12e6   :  { %v3917_v42 = vadd.f32 %v3131_v49, %v4494_v0  ;;  %v3825_v43 = vpop.f32.mrb[21].mxu0 }
0x12e8   :  { %v3136_v44 = vmax.f32 %v3917_v42, 0.0 }
0x12ea   :  { %3138 = vrot.lane.b32.xlu1 %v3136_v44, %s4090_s30  ;;  %s3375_s30 = sshll.u32 %s4098_s14, 4  ;;  %s3376_s30 = int_to_ptr.vmem [resolvable:$true] %s3375_s30 }
0x12eb   :  { %p4061_p3 = scmp.lt.s32.totalorder %s3376_s30, %s3376_s30 }
0x135c   :  { %v3139_v27 = vpop.permute.xlu1 %3138 }
0x135d   :  { %3141 = vst.msk [vmem:[#allocation5] sm:$0xf] %vm1309_vm14, %v3139_v27 }
0x1364   :  { %v3142_v59 = vld [vmem:[#allocation5] sm:$0xf] }
0x1365   :  { %3292 = vrot.lane.b32.xlu1 %v3142_v59, %s4095_s20  ;;  %3217 = vrot.lane.b32.xlu0 %v3142_v59, %s4094_s4  ;;  %s4056_s4 = scalar_lea.vmem %s3376_s30, 128 }
0x1366   :  { %3827 = vmatpush3.msk.msra.mxu1 %vm1323_vm4, %v3142_v59  ;;  %p4057_p2 = scmp.ne.s32.totalorder %s3376_s30, %s4056_s4  ;;  %p4062_p4 = scmp.lt.s32.totalorder %s4056_s4, %s4056_s4 }
0x1367   :  { %3829 = vmatmul.mubr.msk.f32.vlgmr.msra.gmra.mrb[20].mxu1 %vm1568_vm9, %v4505_v23  ;;  %3831 = vmatprep.subr.mxu1 %v4091_v24 }
0x1368   :  { %3833 = vmatprep.mubr.msk.f32.mxu1 %vm4093_vm6, %v4091_v24  ;;  %p4063_p5 = por %p4062_p4, %p4061_p3 }
0x1369   :  { %163 = vperm.xlu0 %3970, %v160_v46  }
0x136a   :  { %p4064_p6 = pnand %p4063_p5, %p4057_p2 }
0x13d7   :  { %v3218_v62 = vpop.permute.xlu0 %3217  ;;  %v3293_v0 = vpop.permute.xlu1 %3292 }
0x13d8   :  { %3832 = vmatpush3.msk.msra.mxu1 %vm1323_vm4, %v3218_v62 }
0x13d9   :  { %3834 = vmatmul.mubr.msk.f32.vlgmr.msra.gmra.mrb[20].mxu1 %vm1568_vm9, %v4526_v28  ;;  %3836 = vmatprep.subr.mxu1 %v4091_v24 }
0x13da   :  { %3837 = vmatpush3.msk.msra.mxu1 %vm1323_vm4, %v3293_v0  ;;  %3838 = vmatprep.mubr.msk.f32.mxu1 %vm4093_vm6, %v4091_v24 }
0x13e1   :  { %3839 = vmatmul.mubr.msk.f32.vlgmr.msra.gmra.mrb[20].mxu1 %vm1568_vm9, %v4535_v12 }
0x13e8   :  { %v164_v23 = vpop.permute.xlu0 %163 }
0x13e9   :  { %v3914_v45 = vadd.f32 %v4550_v33, %v164_v23 }
0x13eb   :  { %v1802_v47 = vmax.f32 %v3914_v45, 0.0 }
0x13ed   :  { %1804 = vst.msk [vmem:[#allocation11] sm:$0xf] %vm1803_vm0, %v1802_v47 }
0x14b4   :  { %v3362_v26 = vpop.f32.mrb[20].mxu1 }
0x14b5   :  { %v3918_v28 = vadd.f32 %v3362_v26, %v164_v23  ;;  %v3840_v25 = vpop.f32.mrb[21].mxu1 }
0x14b7   :  { %v3367_v50 = vmax.f32 %v3918_v28, 0.0 }
0x14b9   :  { %3369 = vst.msk [vmem:[#allocation11 + $0x4] sm:$0xf] %vm1803_vm0, %v3367_v50 }
0x14ba   :  { %4067 = shalt.err (!%p4064_p6)
}
0x14bb   :  { %s4068_s19 = scalar_lea.hbm %s4721_s15, 128 }
0x14bc   :  { %p4069_p7 = scmp.ne.s32.totalorder %s4721_s15, %s4068_s19  ;;  %p4072_p8 = scmp.lt.u32.totalorder %s4068_s19, %s4721_s15 }
0x14be   :  { %p4074_p9 = pnand %p4072_p8, %p4069_p7 }
0x14c0   :  { %4077 = shalt.err (!%p4074_p9)
}
0x14c1   :  { %3381 = dma.vmem_to_hbm [thread:$0]  %s3376_s30, 128, %s4721_s15, [#allocation8], %s4085_s28, %s4085_s28, %s4086_s29  }
0x14c2   :  { %4082 = dma.done.wait [#allocation8], 128  }
0x14c3   :  { %4083 = vsyncadd [#allocation8], 4294967168 }
0x14c4   :  { %3385 = vsyncpa [#allocation7], 1 }
0x14c5   :  { %3386 = vsyncpa [#allocation10], 1 }
0x14c6   :  { %3387 = vsyncpa [#allocation8], 1 }

</bundles_post_ra>
